<compile_context>
chip_gen: v5e
topology: v5e:2x2
jax: 0.10.0
libtpu: 0.0.40
codegen_flags: <defaults>
</compile_context>

<pallas_src>
import functools

import jax
import jax.numpy as jnp
from jax import lax
from jax.experimental import pallas as pl
from jax.experimental.pallas import tpu as pltpu

_LANE = 128


def _bottleneck_kernel(x_ref, w1_ref, w2_ref, w3_ref,
                       s1_ref, b1_ref, s2_ref, b2_ref, s3_ref, b3_ref,
                       out_ref, *, tile_h, img_h, width, dilation):
    # x_ref:   (1, TH + 2d, W, Cp)   bf16 haloed row tile (zero rows outside image)
    # w1_ref:  (Cp, Pp)              bf16
    # w2_ref:  (3, 3, Pp, Pp)        bf16 (HWIO)
    # w3_ref:  (Pp, Cp)              bf16
    # s*/b*:   (1, Pp) / (1, Cp)     f32 folded BN scale / bias
    # out_ref: (1, TH, W, Cp)        f32
    d, W, TH, H = dilation, width, tile_h, img_h
    R = TH + 2 * d
    Cp = w1_ref.shape[0]
    Pp = w1_ref.shape[1]
    Co = w3_ref.shape[1]

    h = pl.program_id(1)

    xb = x_ref[0]                                      # (R, W, Cp) bf16
    x_flat = xb.reshape(R * W, Cp)

    # ---- conv1 (1x1) + bn1 + relu ----------------------------------------------
    pre1 = jnp.dot(x_flat, w1_ref[...], preferred_element_type=jnp.float32)
    pre1 = (pre1 * s1_ref[...] + b1_ref[...]).reshape(R, W, Pp)

    # Halo rows that fall outside the image must be ZERO activations (conv2 zero-pads
    # the conv1 OUTPUT in PyTorch), not relu(b1): mask them here.
    row_ids = lax.broadcasted_iota(jnp.int32, (R, W, 1), 0)
    col_ids = lax.broadcasted_iota(jnp.int32, (R, W, 1), 1)
    orig_row = row_ids + (h * TH - d)
    in_image = jnp.logical_and(orig_row >= 0, orig_row < H)
    t1 = jnp.where(in_image, jnp.maximum(pre1, 0.0), 0.0)          # (R, W, Pp) f32

    # ---- conv2 (3x3, dilation d, padding d) + bn2 + relu -------------------------
    # Three W-shifted copies with zero fill at the borders (rolls -> XLU, masks -> VPU);
    # the 9 taps then only need leading-axis row slices, which are layout-aligned.
    t1c = t1.astype(jnp.bfloat16)
    t1l = jnp.where(col_ids >= d,
                    pltpu.roll(t1, d, axis=1), 0.0).astype(jnp.bfloat16)
    t1r = jnp.where(col_ids < W - d,
                    pltpu.roll(t1, W - d, axis=1), 0.0).astype(jnp.bfloat16)
    taps = (t1l, t1c, t1r)

    acc = jnp.zeros((TH * W, Pp), jnp.float32)
    for ky in range(3):
        r0 = ky * d
        for kx in range(3):
            win = taps[kx][r0:r0 + TH].reshape(TH * W, Pp)
            acc = acc + jnp.dot(win, w2_ref[ky, kx, :, :],
                                preferred_element_type=jnp.float32)
    t2 = jnp.maximum(acc * s2_ref[...] + b2_ref[...], 0.0)          # (TH*W, Pp) f32

    # ---- conv3 (1x1) + bn3 + residual add + relu ---------------------------------
    out = jnp.dot(t2.astype(jnp.bfloat16), w3_ref[...],
                  preferred_element_type=jnp.float32)
    out = out * s3_ref[...] + b3_ref[...]
    resid = xb[d:d + TH].reshape(TH * W, Cp).astype(jnp.float32)    # identity residual
    out = jnp.maximum(out + resid, 0.0)
    out_ref[...] = out.reshape(1, TH, W, Co).astype(out_ref.dtype)


def _fold_bn(gamma, beta, mean, var, eps=1e-5):
    scale = gamma / jnp.sqrt(var + eps)
    bias = beta - mean * scale
    return scale, bias


def _round_up(v, m):
    return ((v + m - 1) // m) * m


def _pad_to(a, axis, size):
    if a.shape[axis] == size:
        return a
    pad = [(0, 0)] * a.ndim
    pad[axis] = (0, size - a.shape[axis])
    return jnp.pad(a, pad)


def _estimate_vmem_bytes(th, W, d, cp, pp):
    r = th + 2 * d
    bf, f32 = 2, 4
    x_tile = r * W * cp * bf
    o_tile = th * W * cp * f32
    w_bytes = (cp * pp + 9 * pp * pp + pp * cp) * bf + 6 * max(pp, cp) * f32
    temps = (r * W * pp * (2 * f32 + 3 * bf)          # t1 (f32) + 3 bf16 shifted copies
             + th * W * pp * 2 * f32                  # acc + t2
             + th * W * cp * 2 * f32)                 # out + residual
    return 2 * (x_tile + o_tile + w_bytes) + temps    # x/out/weights are double-buffered


def _choose_tile_rows(H, W, d, cp, pp, budget_bytes, max_rows):
    cap = min(H, max_rows if max_rows else H)
    best = 1
    for th in range(1, cap + 1):
        if H % th == 0 and _estimate_vmem_bytes(th, W, d, cp, pp) <= budget_bytes:
            best = th
    return best


def bottleneck_pallas(x_nchw, params, dilation=2, *,
                      vmem_budget_bytes=40 * 1024 * 1024, max_tile_rows=None):
    """Bottleneck forward (stride=1, downsample=None, frozen/inference BN).

    params: dict of conv weights (OIHW) and bn tuples (gamma, beta, mean, var)."""
    d = int(dilation)
    x = jnp.transpose(x_nchw, (0, 2, 3, 1)).astype(jnp.float32)     # NCHW -> NHWC
    N, H, W, Cin = x.shape
    assert W > d, "width must exceed the dilation"

    P = params["w1"].shape[0]
    Cout = params["w3"].shape[0]
    assert Cin == Cout, "identity residual requires inplanes == planes * 4"

    # lane-aligned channel sizes (real ResNet sizes are already multiples of 128)
    Cp = _round_up(Cin, _LANE)
    Pp = _round_up(P, _LANE)

    # ---- weights: OIHW -> channel-contraction matrices, zero-padded, bf16 ---------
    w1 = jnp.transpose(params["w1"][:, :, 0, 0])                    # (Cin, P)
    w2 = jnp.transpose(params["w2"], (2, 3, 1, 0))                  # (3, 3, P, P) HWIO
    w3 = jnp.transpose(params["w3"][:, :, 0, 0])                    # (P, Cout)
    w1 = _pad_to(_pad_to(w1, 0, Cp), 1, Pp).astype(jnp.bfloat16)
    w2 = _pad_to(_pad_to(w2, 2, Pp), 3, Pp).astype(jnp.bfloat16)
    w3 = _pad_to(_pad_to(w3, 0, Pp), 1, Cp).astype(jnp.bfloat16)

    # ---- folded inference-mode BN (padded channels get scale=bias=0 -> stay 0) ----
    s1, b1 = _fold_bn(*params["bn1"])
    s2, b2 = _fold_bn(*params["bn2"])
    s3, b3 = _fold_bn(*params["bn3"])
    s1 = _pad_to(s1.reshape(1, P), 1, Pp).astype(jnp.float32)
    b1 = _pad_to(b1.reshape(1, P), 1, Pp).astype(jnp.float32)
    s2 = _pad_to(s2.reshape(1, P), 1, Pp).astype(jnp.float32)
    b2 = _pad_to(b2.reshape(1, P), 1, Pp).astype(jnp.float32)
    s3 = _pad_to(s3.reshape(1, Cout), 1, Cp).astype(jnp.float32)
    b3 = _pad_to(b3.reshape(1, Cout), 1, Cp).astype(jnp.float32)

    # ---- row tiling with a d-row halo, sized against the VMEM budget --------------
    TH = _choose_tile_rows(H, W, d, Cp, Pp, vmem_budget_bytes, max_tile_rows)
    num_h = H // TH
    R = TH + 2 * d

    xc = _pad_to(x, 3, Cp).astype(jnp.bfloat16)                     # (N, H, W, Cp)
    xp = jnp.pad(xc, ((0, 0), (d, d), (0, 0), (0, 0)))              # zero rows top/bot
    # materialize haloed row tiles: (N * num_h, TH + 2d, W, Cp)
    x_halo = jnp.stack([xp[:, i * TH:i * TH + R] for i in range(num_h)], axis=1)
    x_halo = x_halo.reshape(N * num_h, R, W, Cp)

    kernel = functools.partial(_bottleneck_kernel, tile_h=TH, img_h=H,
                               width=W, dilation=d)

    flops = 2 * N * num_h * W * (R * Cp * Pp + 9 * TH * Pp * Pp + TH * Pp * Cp)
    bytes_accessed = (x_halo.size * 2 + N * H * W * Cp * 4
                      + (w1.size + w2.size + w3.size) * 2)
    vmem_limit = int(min(max(_estimate_vmem_bytes(TH, W, d, Cp, Pp) + (16 << 20),
                             32 << 20), 112 << 20))

    full2 = lambda n, h: (0, 0)
    full4 = lambda n, h: (0, 0, 0, 0)

    out_nhwc = pl.pallas_call(
        kernel,
        out_shape=jax.ShapeDtypeStruct((N, H, W, Cp), jnp.float32),
        grid_spec=pltpu.PrefetchScalarGridSpec(
            num_scalar_prefetch=0,
            grid=(N, num_h),
            in_specs=[
                pl.BlockSpec((1, R, W, Cp), lambda n, h: (n * num_h + h, 0, 0, 0)),
                pl.BlockSpec((Cp, Pp), full2),
                pl.BlockSpec((3, 3, Pp, Pp), full4),
                pl.BlockSpec((Pp, Cp), full2),
                pl.BlockSpec((1, Pp), full2),
                pl.BlockSpec((1, Pp), full2),
                pl.BlockSpec((1, Pp), full2),
                pl.BlockSpec((1, Pp), full2),
                pl.BlockSpec((1, Cp), full2),
                pl.BlockSpec((1, Cp), full2),
            ],
            out_specs=pl.BlockSpec((1, TH, W, Cp), lambda n, h: (n, h, 0, 0)),
        ),
        compiler_params=pltpu.CompilerParams(
            dimension_semantics=("parallel", "parallel"),
            vmem_limit_bytes=vmem_limit),
        cost_estimate=pl.CostEstimate(flops=int(flops), transcendentals=0,
                                      bytes_accessed=int(bytes_accessed)),
    )(x_halo, w1, w2, w3, s1, b1, s2, b2, s3, b3)

    out = out_nhwc[..., :Cout]
    return jnp.transpose(out, (0, 3, 1, 2))                         # back to NCHW


# ------------------------- pure-JAX reference (for checking) -------------------------
def bottleneck_ref(x, params, dilation=2):
    dn = ("NCHW", "OIHW", "NCHW")

    def bn(y, p):
        s, b = _fold_bn(*p)
        return y * s[None, :, None, None] + b[None, :, None, None]

    out = lax.conv_general_dilated(x, params["w1"], (1, 1), "VALID",
                                   dimension_numbers=dn)
    out = jnp.maximum(bn(out, params["bn1"]), 0.0)
    out = lax.conv_general_dilated(out, params["w2"], (1, 1),
                                   [(dilation, dilation), (dilation, dilation)],
                                   rhs_dilation=(dilation, dilation),
                                   dimension_numbers=dn)
    out = jnp.maximum(bn(out, params["bn2"]), 0.0)
    out = lax.conv_general_dilated(out, params["w3"], (1, 1), "VALID",
                                   dimension_numbers=dn)
    out = bn(out, params["bn3"])
    return jnp.maximum(out + x, 0.0)


def make_params(key, inplanes, planes):
    ks = jax.random.split(key, 16)
    expansion = 4

    def bn_params(k, c):
        k1, k2, k3, k4 = jax.random.split(k, 4)
        gamma = jax.random.uniform(k1, (c,), jnp.float32, 0.5, 1.5)
        beta = 0.1 * jax.random.normal(k2, (c,), jnp.float32)
        mean = 0.1 * jax.random.normal(k3, (c,), jnp.float32)
        var = jax.random.uniform(k4, (c,), jnp.float32, 0.5, 1.5)
        return (gamma, beta, mean, var)

    return {
        "w1": 0.1 * jax.random.normal(ks[0], (planes, inplanes, 1, 1), jnp.float32),
        "w2": 0.1 * jax.random.normal(ks[1], (planes, planes, 3, 3), jnp.float32),
        "w3": 0.1 * jax.random.normal(ks[2], (planes * expansion, planes, 1, 1),
                                      jnp.float32),
        "bn1": bn_params(ks[3], planes),
        "bn2": bn_params(ks[4], planes),
        "bn3": bn_params(ks[5], planes * expansion),
    }


if __name__ == "__main__":
    key = jax.random.PRNGKey(0)
    k_x, k_p = jax.random.split(key)

    # inplanes == planes*4 -> identity residual (module defaults: stride=1, downsample=None)
    N, inplanes, planes, H, W = 2, 16, 4, 16, 16
    dilation = 2

    x = jax.random.normal(k_x, (N, inplanes, H, W), jnp.float32)    # NCHW, like PyTorch
    params = make_params(k_p, inplanes, planes)

    # max_tile_rows=8 -> 2 row tiles per image, exercising the halo/tiling path.
    out = bottleneck_pallas(x, params, dilation=dilation, max_tile_rows=8)
    out = jax.block_until_ready(out)

    ref = jax.block_until_ready(bottleneck_ref(x, params, dilation=dilation))
    assert out.shape == (N, planes * 4, H, W)
    max_err = float(jnp.max(jnp.abs(out - ref)))
    # bf16 matmul operands -> looser tolerance than the f32 reference
    assert jnp.allclose(out, ref, atol=5e-2, rtol=5e-2), f"mismatch vs ref (max {max_err})"

    print("KERNEL_OK")
</pallas_src>

<mosaic_0001>
module attributes {stable_mosaic.version = 11 : i64} {
  func.func @_bottleneck_kernel(%arg0: i32, %arg1: i32, %arg2: memref<1x12x16x128xbf16, #tpu.memory_space<vmem>>, %arg3: memref<128x128xbf16, #tpu.memory_space<vmem>>, %arg4: memref<3x3x128x128xbf16, #tpu.memory_space<vmem>>, %arg5: memref<128x128xbf16, #tpu.memory_space<vmem>>, %arg6: memref<1x128xf32, #tpu.memory_space<vmem>>, %arg7: memref<1x128xf32, #tpu.memory_space<vmem>>, %arg8: memref<1x128xf32, #tpu.memory_space<vmem>>, %arg9: memref<1x128xf32, #tpu.memory_space<vmem>>, %arg10: memref<1x128xf32, #tpu.memory_space<vmem>>, %arg11: memref<1x128xf32, #tpu.memory_space<vmem>>, %arg12: memref<1x8x16x128xf32, #tpu.memory_space<vmem>>) attributes {dimension_semantics = [#tpu.dimension_semantics<parallel>, #tpu.dimension_semantics<parallel>], iteration_bounds = array<i64: 2, 2>, scalar_prefetch = 0 : i64, scratch_operands = 0 : i64, tpu.core_type = #tpu.core_type<tc>, window_params = [{transform_indices = @transform_0, window_bounds = array<i64: 1, 12, 16, 128>}, {pipeline_mode = #tpu.pipeline_mode<synchronous>, transform_indices = @transform_1, window_bounds = array<i64: 128, 128>}, {pipeline_mode = #tpu.pipeline_mode<synchronous>, transform_indices = @transform_2, window_bounds = array<i64: 3, 3, 128, 128>}, {pipeline_mode = #tpu.pipeline_mode<synchronous>, transform_indices = @transform_3, window_bounds = array<i64: 128, 128>}, {pipeline_mode = #tpu.pipeline_mode<synchronous>, transform_indices = @transform_4, window_bounds = array<i64: 1, 128>}, {pipeline_mode = #tpu.pipeline_mode<synchronous>, transform_indices = @transform_5, window_bounds = array<i64: 1, 128>}, {pipeline_mode = #tpu.pipeline_mode<synchronous>, transform_indices = @transform_6, window_bounds = array<i64: 1, 128>}, {pipeline_mode = #tpu.pipeline_mode<synchronous>, transform_indices = @transform_7, window_bounds = array<i64: 1, 128>}, {pipeline_mode = #tpu.pipeline_mode<synchronous>, transform_indices = @transform_8, window_bounds = array<i64: 1, 128>}, {pipeline_mode = #tpu.pipeline_mode<synchronous>, transform_indices = @transform_9, window_bounds = array<i64: 1, 128>}, {transform_indices = @transform_10, window_bounds = array<i64: 1, 8, 16, 128>}]} {
    %c0 = arith.constant 0 : index
    %c0_0 = arith.constant 0 : index
    %c0_1 = arith.constant 0 : index
    %c0_2 = arith.constant 0 : index
    %0 = vector.load %arg2[%c0, %c0_0, %c0_1, %c0_2] : memref<1x12x16x128xbf16, #tpu.memory_space<vmem>>, vector<1x12x16x128xbf16>
    %1 = vector.shape_cast %0 : vector<1x12x16x128xbf16> to vector<12x16x128xbf16>
    %2 = vector.shape_cast %1 : vector<12x16x128xbf16> to vector<192x128xbf16>
    %c0_3 = arith.constant 0 : index
    %c0_4 = arith.constant 0 : index
    %3 = vector.load %arg3[%c0_3, %c0_4] : memref<128x128xbf16, #tpu.memory_space<vmem>>, vector<128x128xbf16>
    %cst = arith.constant dense<0.000000e+00> : vector<192x128xf32>
    %4 = tpu.matmul %2, %3, %cst {dimension_numbers = #tpu.dot_dimension_numbers<[1], [0], [0], [1], [0, 0, 1, 1], [], []>} : vector<192x128xbf16>, vector<128x128xbf16>, vector<192x128xf32> -> vector<192x128xf32>
    %c0_5 = arith.constant 0 : index
    %c0_6 = arith.constant 0 : index
    %5 = vector.load %arg6[%c0_5, %c0_6] : memref<1x128xf32, #tpu.memory_space<vmem>>, vector<1x128xf32>
    %6 = vector.broadcast %5 : vector<1x128xf32> to vector<192x128xf32>
    %7 = arith.mulf %4, %6 : vector<192x128xf32>
    %c0_7 = arith.constant 0 : index
    %c0_8 = arith.constant 0 : index
    %8 = vector.load %arg7[%c0_7, %c0_8] : memref<1x128xf32, #tpu.memory_space<vmem>>, vector<1x128xf32>
    %9 = vector.broadcast %8 : vector<1x128xf32> to vector<192x128xf32>
    %10 = arith.addf %7, %9 : vector<192x128xf32>
    %11 = vector.shape_cast %10 : vector<192x128xf32> to vector<12x16x128xf32>
    %12 = tpu.iota {dimensions = array<i32: 0>} : vector<12x16x1xi32>
    %13 = tpu.iota {dimensions = array<i32: 1>} : vector<12x16x1xi32>
    %c8_i32 = arith.constant 8 : i32
    %14 = arith.muli %arg1, %c8_i32 : i32
    %c2_i32 = arith.constant 2 : i32
    %15 = arith.subi %14, %c2_i32 : i32
    %16 = vector.broadcast %15 : i32 to vector<12x16x1xi32>
    %17 = arith.addi %12, %16 : vector<12x16x1xi32>
    %c0_i32 = arith.constant 0 : i32
    %18 = vector.broadcast %c0_i32 : i32 to vector<12x16x1xi32>
    %19 = arith.cmpi sge, %17, %18 : vector<12x16x1xi32>
    %c16_i32 = arith.constant 16 : i32
    %20 = vector.broadcast %c16_i32 : i32 to vector<12x16x1xi32>
    %21 = arith.cmpi slt, %17, %20 : vector<12x16x1xi32>
    %22 = arith.andi %19, %21 : vector<12x16x1xi1>
    %cst_9 = arith.constant 0.000000e+00 : f32
    %23 = vector.broadcast %cst_9 : f32 to vector<12x16x128xf32>
    %24 = arith.maximumf %11, %23 : vector<12x16x128xf32>
    %cst_10 = arith.constant 0.000000e+00 : f32
    %25 = vector.shape_cast %22 : vector<12x16x1xi1> to vector<12x16x1xi1>
    %26 = vector.broadcast %25 : vector<12x16x1xi1> to vector<12x16x128xi1>
    %27 = vector.broadcast %cst_10 : f32 to vector<12x16x128xf32>
    %28 = arith.select %26, %24, %27 : vector<12x16x128xi1>, vector<12x16x128xf32>
    %29 = arith.truncf %28 : vector<12x16x128xf32> to vector<12x16x128xbf16>
    %c2_i32_11 = arith.constant 2 : i32
    %30 = vector.broadcast %c2_i32_11 : i32 to vector<12x16x1xi32>
    %31 = arith.cmpi sge, %13, %30 : vector<12x16x1xi32>
    %c2_i32_12 = arith.constant 2 : i32
    %32 = tpu.dynamic_rotate %28 by %c2_i32_12 dim 1 : vector<12x16x128xf32>, i32 -> vector<12x16x128xf32>
    %cst_13 = arith.constant 0.000000e+00 : f32
    %33 = vector.shape_cast %31 : vector<12x16x1xi1> to vector<12x16x1xi1>
    %34 = vector.broadcast %33 : vector<12x16x1xi1> to vector<12x16x128xi1>
    %35 = vector.broadcast %cst_13 : f32 to vector<12x16x128xf32>
    %36 = arith.select %34, %32, %35 : vector<12x16x128xi1>, vector<12x16x128xf32>
    %37 = arith.truncf %36 : vector<12x16x128xf32> to vector<12x16x128xbf16>
    %c14_i32 = arith.constant 14 : i32
    %38 = vector.broadcast %c14_i32 : i32 to vector<12x16x1xi32>
    %39 = arith.cmpi slt, %13, %38 : vector<12x16x1xi32>
    %c14_i32_14 = arith.constant 14 : i32
    %40 = tpu.dynamic_rotate %28 by %c14_i32_14 dim 1 : vector<12x16x128xf32>, i32 -> vector<12x16x128xf32>
    %cst_15 = arith.constant 0.000000e+00 : f32
    %41 = vector.shape_cast %39 : vector<12x16x1xi1> to vector<12x16x1xi1>
    %42 = vector.broadcast %41 : vector<12x16x1xi1> to vector<12x16x128xi1>
    %43 = vector.broadcast %cst_15 : f32 to vector<12x16x128xf32>
    %44 = arith.select %42, %40, %43 : vector<12x16x128xi1>, vector<12x16x128xf32>
    %45 = arith.truncf %44 : vector<12x16x128xf32> to vector<12x16x128xbf16>
    %cst_16 = arith.constant 0.000000e+00 : f32
    %46 = vector.broadcast %cst_16 : f32 to vector<128x128xf32>
    %47 = vector.extract_strided_slice %37 {offsets = [0, 0, 0], sizes = [8, 16, 128], strides = [1, 1, 1]} : vector<12x16x128xbf16> to vector<8x16x128xbf16>
    %48 = vector.shape_cast %47 : vector<8x16x128xbf16> to vector<128x128xbf16>
    %c0_17 = arith.constant 0 : index
    %c0_18 = arith.constant 0 : index
    %c0_19 = arith.constant 0 : index
    %c0_20 = arith.constant 0 : index
    %49 = vector.load %arg4[%c0_17, %c0_18, %c0_19, %c0_20] : memref<3x3x128x128xbf16, #tpu.memory_space<vmem>>, vector<1x1x128x128xbf16>
    %50 = vector.shape_cast %49 : vector<1x1x128x128xbf16> to vector<128x128xbf16>
    %cst_21 = arith.constant dense<0.000000e+00> : vector<128x128xf32>
    %51 = tpu.matmul %48, %50, %cst_21 {dimension_numbers = #tpu.dot_dimension_numbers<[1], [0], [0], [1], [0, 0, 1, 1], [], []>} : vector<128x128xbf16>, vector<128x128xbf16>, vector<128x128xf32> -> vector<128x128xf32>
    %52 = arith.addf %46, %51 : vector<128x128xf32>
    %53 = vector.extract_strided_slice %29 {offsets = [0, 0, 0], sizes = [8, 16, 128], strides = [1, 1, 1]} : vector<12x16x128xbf16> to vector<8x16x128xbf16>
    %54 = vector.shape_cast %53 : vector<8x16x128xbf16> to vector<128x128xbf16>
    %c0_22 = arith.constant 0 : index
    %c1 = arith.constant 1 : index
    %c0_23 = arith.constant 0 : index
    %c0_24 = arith.constant 0 : index
    %55 = vector.load %arg4[%c0_22, %c1, %c0_23, %c0_24] : memref<3x3x128x128xbf16, #tpu.memory_space<vmem>>, vector<1x1x128x128xbf16>
    %56 = vector.shape_cast %55 : vector<1x1x128x128xbf16> to vector<128x128xbf16>
    %cst_25 = arith.constant dense<0.000000e+00> : vector<128x128xf32>
    %57 = tpu.matmul %54, %56, %cst_25 {dimension_numbers = #tpu.dot_dimension_numbers<[1], [0], [0], [1], [0, 0, 1, 1], [], []>} : vector<128x128xbf16>, vector<128x128xbf16>, vector<128x128xf32> -> vector<128x128xf32>
    %58 = arith.addf %52, %57 : vector<128x128xf32>
    %59 = vector.extract_strided_slice %45 {offsets = [0, 0, 0], sizes = [8, 16, 128], strides = [1, 1, 1]} : vector<12x16x128xbf16> to vector<8x16x128xbf16>
    %60 = vector.shape_cast %59 : vector<8x16x128xbf16> to vector<128x128xbf16>
    %c0_26 = arith.constant 0 : index
    %c2 = arith.constant 2 : index
    %c0_27 = arith.constant 0 : index
    %c0_28 = arith.constant 0 : index
    %61 = vector.load %arg4[%c0_26, %c2, %c0_27, %c0_28] : memref<3x3x128x128xbf16, #tpu.memory_space<vmem>>, vector<1x1x128x128xbf16>
    %62 = vector.shape_cast %61 : vector<1x1x128x128xbf16> to vector<128x128xbf16>
    %cst_29 = arith.constant dense<0.000000e+00> : vector<128x128xf32>
    %63 = tpu.matmul %60, %62, %cst_29 {dimension_numbers = #tpu.dot_dimension_numbers<[1], [0], [0], [1], [0, 0, 1, 1], [], []>} : vector<128x128xbf16>, vector<128x128xbf16>, vector<128x128xf32> -> vector<128x128xf32>
    %64 = arith.addf %58, %63 : vector<128x128xf32>
    %65 = vector.extract_strided_slice %37 {offsets = [2, 0, 0], sizes = [8, 16, 128], strides = [1, 1, 1]} : vector<12x16x128xbf16> to vector<8x16x128xbf16>
    %66 = vector.shape_cast %65 : vector<8x16x128xbf16> to vector<128x128xbf16>
    %c1_30 = arith.constant 1 : index
    %c0_31 = arith.constant 0 : index
    %c0_32 = arith.constant 0 : index
    %c0_33 = arith.constant 0 : index
    %67 = vector.load %arg4[%c1_30, %c0_31, %c0_32, %c0_33] : memref<3x3x128x128xbf16, #tpu.memory_space<vmem>>, vector<1x1x128x128xbf16>
    %68 = vector.shape_cast %67 : vector<1x1x128x128xbf16> to vector<128x128xbf16>
    %cst_34 = arith.constant dense<0.000000e+00> : vector<128x128xf32>
    %69 = tpu.matmul %66, %68, %cst_34 {dimension_numbers = #tpu.dot_dimension_numbers<[1], [0], [0], [1], [0, 0, 1, 1], [], []>} : vector<128x128xbf16>, vector<128x128xbf16>, vector<128x128xf32> -> vector<128x128xf32>
    %70 = arith.addf %64, %69 : vector<128x128xf32>
    %71 = vector.extract_strided_slice %29 {offsets = [2, 0, 0], sizes = [8, 16, 128], strides = [1, 1, 1]} : vector<12x16x128xbf16> to vector<8x16x128xbf16>
    %72 = vector.shape_cast %71 : vector<8x16x128xbf16> to vector<128x128xbf16>
    %c1_35 = arith.constant 1 : index
    %c1_36 = arith.constant 1 : index
    %c0_37 = arith.constant 0 : index
    %c0_38 = arith.constant 0 : index
    %73 = vector.load %arg4[%c1_35, %c1_36, %c0_37, %c0_38] : memref<3x3x128x128xbf16, #tpu.memory_space<vmem>>, vector<1x1x128x128xbf16>
    %74 = vector.shape_cast %73 : vector<1x1x128x128xbf16> to vector<128x128xbf16>
    %cst_39 = arith.constant dense<0.000000e+00> : vector<128x128xf32>
    %75 = tpu.matmul %72, %74, %cst_39 {dimension_numbers = #tpu.dot_dimension_numbers<[1], [0], [0], [1], [0, 0, 1, 1], [], []>} : vector<128x128xbf16>, vector<128x128xbf16>, vector<128x128xf32> -> vector<128x128xf32>
    %76 = arith.addf %70, %75 : vector<128x128xf32>
    %77 = vector.extract_strided_slice %45 {offsets = [2, 0, 0], sizes = [8, 16, 128], strides = [1, 1, 1]} : vector<12x16x128xbf16> to vector<8x16x128xbf16>
    %78 = vector.shape_cast %77 : vector<8x16x128xbf16> to vector<128x128xbf16>
    %c1_40 = arith.constant 1 : index
    %c2_41 = arith.constant 2 : index
    %c0_42 = arith.constant 0 : index
    %c0_43 = arith.constant 0 : index
    %79 = vector.load %arg4[%c1_40, %c2_41, %c0_42, %c0_43] : memref<3x3x128x128xbf16, #tpu.memory_space<vmem>>, vector<1x1x128x128xbf16>
    %80 = vector.shape_cast %79 : vector<1x1x128x128xbf16> to vector<128x128xbf16>
    %cst_44 = arith.constant dense<0.000000e+00> : vector<128x128xf32>
    %81 = tpu.matmul %78, %80, %cst_44 {dimension_numbers = #tpu.dot_dimension_numbers<[1], [0], [0], [1], [0, 0, 1, 1], [], []>} : vector<128x128xbf16>, vector<128x128xbf16>, vector<128x128xf32> -> vector<128x128xf32>
    %82 = arith.addf %76, %81 : vector<128x128xf32>
    %83 = vector.extract_strided_slice %37 {offsets = [4, 0, 0], sizes = [8, 16, 128], strides = [1, 1, 1]} : vector<12x16x128xbf16> to vector<8x16x128xbf16>
    %84 = vector.shape_cast %83 : vector<8x16x128xbf16> to vector<128x128xbf16>
    %c2_45 = arith.constant 2 : index
    %c0_46 = arith.constant 0 : index
    %c0_47 = arith.constant 0 : index
    %c0_48 = arith.constant 0 : index
    %85 = vector.load %arg4[%c2_45, %c0_46, %c0_47, %c0_48] : memref<3x3x128x128xbf16, #tpu.memory_space<vmem>>, vector<1x1x128x128xbf16>
    %86 = vector.shape_cast %85 : vector<1x1x128x128xbf16> to vector<128x128xbf16>
    %cst_49 = arith.constant dense<0.000000e+00> : vector<128x128xf32>
    %87 = tpu.matmul %84, %86, %cst_49 {dimension_numbers = #tpu.dot_dimension_numbers<[1], [0], [0], [1], [0, 0, 1, 1], [], []>} : vector<128x128xbf16>, vector<128x128xbf16>, vector<128x128xf32> -> vector<128x128xf32>
    %88 = arith.addf %82, %87 : vector<128x128xf32>
    %89 = vector.extract_strided_slice %29 {offsets = [4, 0, 0], sizes = [8, 16, 128], strides = [1, 1, 1]} : vector<12x16x128xbf16> to vector<8x16x128xbf16>
    %90 = vector.shape_cast %89 : vector<8x16x128xbf16> to vector<128x128xbf16>
    %c2_50 = arith.constant 2 : index
    %c1_51 = arith.constant 1 : index
    %c0_52 = arith.constant 0 : index
    %c0_53 = arith.constant 0 : index
    %91 = vector.load %arg4[%c2_50, %c1_51, %c0_52, %c0_53] : memref<3x3x128x128xbf16, #tpu.memory_space<vmem>>, vector<1x1x128x128xbf16>
    %92 = vector.shape_cast %91 : vector<1x1x128x128xbf16> to vector<128x128xbf16>
    %cst_54 = arith.constant dense<0.000000e+00> : vector<128x128xf32>
    %93 = tpu.matmul %90, %92, %cst_54 {dimension_numbers = #tpu.dot_dimension_numbers<[1], [0], [0], [1], [0, 0, 1, 1], [], []>} : vector<128x128xbf16>, vector<128x128xbf16>, vector<128x128xf32> -> vector<128x128xf32>
    %94 = arith.addf %88, %93 : vector<128x128xf32>
    %95 = vector.extract_strided_slice %45 {offsets = [4, 0, 0], sizes = [8, 16, 128], strides = [1, 1, 1]} : vector<12x16x128xbf16> to vector<8x16x128xbf16>
    %96 = vector.shape_cast %95 : vector<8x16x128xbf16> to vector<128x128xbf16>
    %c2_55 = arith.constant 2 : index
    %c2_56 = arith.constant 2 : index
    %c0_57 = arith.constant 0 : index
    %c0_58 = arith.constant 0 : index
    %97 = vector.load %arg4[%c2_55, %c2_56, %c0_57, %c0_58] : memref<3x3x128x128xbf16, #tpu.memory_space<vmem>>, vector<1x1x128x128xbf16>
    %98 = vector.shape_cast %97 : vector<1x1x128x128xbf16> to vector<128x128xbf16>
    %cst_59 = arith.constant dense<0.000000e+00> : vector<128x128xf32>
    %99 = tpu.matmul %96, %98, %cst_59 {dimension_numbers = #tpu.dot_dimension_numbers<[1], [0], [0], [1], [0, 0, 1, 1], [], []>} : vector<128x128xbf16>, vector<128x128xbf16>, vector<128x128xf32> -> vector<128x128xf32>
    %100 = arith.addf %94, %99 : vector<128x128xf32>
    %c0_60 = arith.constant 0 : index
    %c0_61 = arith.constant 0 : index
    %101 = vector.load %arg8[%c0_60, %c0_61] : memref<1x128xf32, #tpu.memory_space<vmem>>, vector<1x128xf32>
    %102 = vector.broadcast %101 : vector<1x128xf32> to vector<128x128xf32>
    %103 = arith.mulf %100, %102 : vector<128x128xf32>
    %c0_62 = arith.constant 0 : index
    %c0_63 = arith.constant 0 : index
    %104 = vector.load %arg9[%c0_62, %c0_63] : memref<1x128xf32, #tpu.memory_space<vmem>>, vector<1x128xf32>
    %105 = vector.broadcast %104 : vector<1x128xf32> to vector<128x128xf32>
    %106 = arith.addf %103, %105 : vector<128x128xf32>
    %cst_64 = arith.constant 0.000000e+00 : f32
    %107 = vector.broadcast %cst_64 : f32 to vector<128x128xf32>
    %108 = arith.maximumf %106, %107 : vector<128x128xf32>
    %109 = arith.truncf %108 : vector<128x128xf32> to vector<128x128xbf16>
    %c0_65 = arith.constant 0 : index
    %c0_66 = arith.constant 0 : index
    %110 = vector.load %arg5[%c0_65, %c0_66] : memref<128x128xbf16, #tpu.memory_space<vmem>>, vector<128x128xbf16>
    %cst_67 = arith.constant dense<0.000000e+00> : vector<128x128xf32>
    %111 = tpu.matmul %109, %110, %cst_67 {dimension_numbers = #tpu.dot_dimension_numbers<[1], [0], [0], [1], [0, 0, 1, 1], [], []>} : vector<128x128xbf16>, vector<128x128xbf16>, vector<128x128xf32> -> vector<128x128xf32>
    %c0_68 = arith.constant 0 : index
    %c0_69 = arith.constant 0 : index
    %112 = vector.load %arg10[%c0_68, %c0_69] : memref<1x128xf32, #tpu.memory_space<vmem>>, vector<1x128xf32>
    %113 = vector.broadcast %112 : vector<1x128xf32> to vector<128x128xf32>
    %114 = arith.mulf %111, %113 : vector<128x128xf32>
    %c0_70 = arith.constant 0 : index
    %c0_71 = arith.constant 0 : index
    %115 = vector.load %arg11[%c0_70, %c0_71] : memref<1x128xf32, #tpu.memory_space<vmem>>, vector<1x128xf32>
    %116 = vector.broadcast %115 : vector<1x128xf32> to vector<128x128xf32>
    %117 = arith.addf %114, %116 : vector<128x128xf32>
    %118 = vector.extract_strided_slice %1 {offsets = [2, 0, 0], sizes = [8, 16, 128], strides = [1, 1, 1]} : vector<12x16x128xbf16> to vector<8x16x128xbf16>
    %119 = vector.shape_cast %118 : vector<8x16x128xbf16> to vector<128x128xbf16>
    %120 = arith.extf %119 : vector<128x128xbf16> to vector<128x128xf32>
    %121 = arith.addf %117, %120 : vector<128x128xf32>
    %cst_72 = arith.constant 0.000000e+00 : f32
    %122 = vector.broadcast %cst_72 : f32 to vector<128x128xf32>
    %123 = arith.maximumf %121, %122 : vector<128x128xf32>
    %124 = vector.shape_cast %123 : vector<128x128xf32> to vector<1x8x16x128xf32>
    %c0_73 = arith.constant 0 : index
    %c0_74 = arith.constant 0 : index
    %c0_75 = arith.constant 0 : index
    %c0_76 = arith.constant 0 : index
    %125 = vector.load %arg12[%c0_73, %c0_74, %c0_75, %c0_76] : memref<1x8x16x128xf32, #tpu.memory_space<vmem>>, vector<1x8x16x128xf32>
    tpu.vector_store %arg12[%c0_73, %c0_74, %c0_75, %c0_76], %124 {strides = array<i32>} : memref<1x8x16x128xf32, #tpu.memory_space<vmem>>, vector<1x8x16x128xf32>,
    return
  }
  func.func @transform_0(%arg0: i32, %arg1: i32) -> (i32, i32, i32, i32) {
    %c2_i32 = arith.constant 2 : i32
    %0 = arith.muli %arg0, %c2_i32 : i32
    %1 = arith.addi %0, %arg1 : i32
    %c0_i32 = arith.constant 0 : i32
    %c0_i32_0 = arith.constant 0 : i32
    %c0_i32_1 = arith.constant 0 : i32
    %c0_i32_2 = arith.constant 0 : i32
    return %1, %c0_i32, %c0_i32_0, %c0_i32_1 : i32, i32, i32, i32
  }
  func.func @transform_1(%arg0: i32, %arg1: i32) -> (i32, i32) {
    %c0_i32 = arith.constant 0 : i32
    %c0_i32_0 = arith.constant 0 : i32
    %c0_i32_1 = arith.constant 0 : i32
    return %c0_i32, %c0_i32_0 : i32, i32
  }
  func.func @transform_2(%arg0: i32, %arg1: i32) -> (i32, i32, i32, i32) {
    %c0_i32 = arith.constant 0 : i32
    %c0_i32_0 = arith.constant 0 : i32
    %c0_i32_1 = arith.constant 0 : i32
    %c0_i32_2 = arith.constant 0 : i32
    %c0_i32_3 = arith.constant 0 : i32
    return %c0_i32, %c0_i32_0, %c0_i32_1, %c0_i32_2 : i32, i32, i32, i32
  }
  func.func @transform_3(%arg0: i32, %arg1: i32) -> (i32, i32) {
    %c0_i32 = arith.constant 0 : i32
    %c0_i32_0 = arith.constant 0 : i32
    %c0_i32_1 = arith.constant 0 : i32
    return %c0_i32, %c0_i32_0 : i32, i32
  }
  func.func @transform_4(%arg0: i32, %arg1: i32) -> (i32, i32) {
    %c0_i32 = arith.constant 0 : i32
    %c0_i32_0 = arith.constant 0 : i32
    %c0_i32_1 = arith.constant 0 : i32
    return %c0_i32, %c0_i32_0 : i32, i32
  }
  func.func @transform_5(%arg0: i32, %arg1: i32) -> (i32, i32) {
    %c0_i32 = arith.constant 0 : i32
    %c0_i32_0 = arith.constant 0 : i32
    %c0_i32_1 = arith.constant 0 : i32
    return %c0_i32, %c0_i32_0 : i32, i32
  }
  func.func @transform_6(%arg0: i32, %arg1: i32) -> (i32, i32) {
    %c0_i32 = arith.constant 0 : i32
    %c0_i32_0 = arith.constant 0 : i32
    %c0_i32_1 = arith.constant 0 : i32
    return %c0_i32, %c0_i32_0 : i32, i32
  }
  func.func @transform_7(%arg0: i32, %arg1: i32) -> (i32, i32) {
    %c0_i32 = arith.constant 0 : i32
    %c0_i32_0 = arith.constant 0 : i32
    %c0_i32_1 = arith.constant 0 : i32
    return %c0_i32, %c0_i32_0 : i32, i32
  }
  func.func @transform_8(%arg0: i32, %arg1: i32) -> (i32, i32) {
    %c0_i32 = arith.constant 0 : i32
    %c0_i32_0 = arith.constant 0 : i32
    %c0_i32_1 = arith.constant 0 : i32
    return %c0_i32, %c0_i32_0 : i32, i32
  }
  func.func @transform_9(%arg0: i32, %arg1: i32) -> (i32, i32) {
    %c0_i32 = arith.constant 0 : i32
    %c0_i32_0 = arith.constant 0 : i32
    %c0_i32_1 = arith.constant 0 : i32
    return %c0_i32, %c0_i32_0 : i32, i32
  }
  func.func @transform_10(%arg0: i32, %arg1: i32) -> (i32, i32, i32, i32) {
    %c0_i32 = arith.constant 0 : i32
    %c0_i32_0 = arith.constant 0 : i32
    %c0_i32_1 = arith.constant 0 : i32
    return %arg0, %arg1, %c0_i32, %c0_i32_0 : i32, i32, i32, i32
  }
}

</mosaic_0001>

<bundles_post_ra>
// kernel: tpu_custom_call.1
= control target key start
LH: loop header
LB: loop body
LE: loop exit
PB: predicated region body
PF: predicated region fallthrough
CT: control target
= control target key end

     0   :  { %s4857_s0 = inlined_call_operand.hbm [shape: bf16[4,12,16,128], index: 0, kind: input, shape index: {}]   ;;  %s4858_s1 = inlined_call_operand.hbm [shape: bf16[128,128], index: 1, kind: input, shape index: {}]   ;;  %s4859_s2 = inlined_call_operand.hbm [shape: bf16[3,3,128,128], index: 2, kind: input, shape index: {}]   ;;  %s4860_s3 = inlined_call_operand.hbm [shape: bf16[128,128], index: 3, kind: input, shape index: {}]   ;;  %s4861_s4 = inlined_call_operand.vmem [shape: f32[1,128], index: 4, kind: input, shape index: {}]   ;;  %s4862_s5 = inlined_call_operand.vmem [shape: f32[1,128], index: 5, kind: input, shape index: {}]   ;;  %s4863_s6 = inlined_call_operand.vmem [shape: f32[1,128], index: 6, kind: input, shape index: {}]   ;;  %s4864_s7 = inlined_call_operand.vmem [shape: f32[1,128], index: 7, kind: input, shape index: {}]   ;;  %s4865_s8 = inlined_call_operand.vmem [shape: f32[1,128], index: 8, kind: input, shape index: {}]   ;;  %s4866_s9 = inlined_call_operand.vmem [shape: f32[1,128], index: 9, kind: input, shape index: {}]   ;;  %s4867_s10 = inlined_call_operand.hbm [shape: f32[2,16,16,128], index: 10, kind: output, shape index: {}]  }
   0x1   :  { %4882 = sst [smem:[#allocation23_spill]] %s4858_s1 }
   0x2   :  { %4883 = sst [smem:[#allocation24_spill]] %s4859_s2 }
   0x3   :  { %4884 = sst [smem:[#allocation25_spill]] %s4860_s3 }
   0x4   :  { %4885 = sst [smem:[#allocation26_spill]] %s4862_s5 }
   0x5   :  { %4886 = sst [smem:[#allocation27_spill]] %s4863_s6 }
   0x6   :  { %4887 = sst [smem:[#allocation28_spill]] %s4864_s7 }
   0x7   :  { %4888 = sst [smem:[#allocation29_spill]] %s4865_s8 }
   0x8   :  { %4889 = sst [smem:[#allocation30_spill]] %s4866_s9 }
   0x9   :  { %4890 = sst [smem:[#allocation31_spill]] %s4867_s10 }
   0xa   :  { %15 = vsyncpa [#allocation3], 0 }
   0xb   :  { %17 = vsyncpa [#allocation3 + $0x1], 0 }
   0xc   :  { %18 = vsyncpa [#allocation6], 0 }
   0xd   :  { %19 = vsyncpa [#allocation9], 0 }
   0xe   :  { %20 = vsyncpa [#allocation4], 0 }
   0xf   :  { %22 = vsyncpa [#allocation4 + $0x1], 0  ;;  %s3860_s13 = smov 0   ;;  %s3862_s14 = smov 0  }
  0x10   :  { %s3864_s15 = smov 0   ;;  %s3866_s16 = smov 0  }
  0x11   :  { %s3868_s17 = smov 0   ;;  %s3870_s18 = smov 0  }
  0x12   :  { %s3872_s19 = smov 0   ;;  %s3874_s20 = smov 0  }
  0x13   :  { %s3876_s21 = smov 0   ;;  %s3878_s22 = smov 0  }
  0x14   :  { %s3880_s23 = smov 0  }
  0x15 LB: > { %4891 = sst [smem:[#allocation15_spill]] %s3756_s13  ;;  %s2864_s24 = sadd.s32 4294967295, %s3796_s23   ;;  %s3796_s23 = sphi %s3880_s23, %s28_s23   ;;  %s3792_s22 = sphi %s3878_s22, %s4947_s22   ;;  %s3788_s21 = sphi %s3876_s21, %s4946_s21   ;;  %s3784_s20 = sphi %s3874_s20, %s4945_s20   ;;  %s3780_s19 = sphi %s3872_s19, %s4938_s19   ;;  %s3776_s18 = sphi %s3870_s18, %s4944_s18   ;;  %s3772_s17 = sphi %s3868_s17, %s4943_s17   ;;  %s3768_s16 = sphi %s3866_s16, %s4942_s16   ;;  %s3764_s15 = sphi %s3864_s15, %s4941_s15   ;;  %s3760_s14 = sphi %s3862_s14, %s4940_s14   ;;  %s3756_s13 = sphi %s3860_s13, %s4937_s13  }
  0x16   : > { %4892 = sst [smem:[#allocation16_spill]] %s3760_s14  ;;  %s2865_s25 = sadd.s32 4294967294, %s3796_s23  }
  0x17   : > { %4893 = sst [smem:[#allocation17_spill]] %s3784_s20  ;;  %p64_p0 = scmp.ne.s32.totalorder %s3772_s17, %s3768_s16 }
  0x18   : > { %4894 = sst [smem:[#allocation18_spill]] %s3788_s21  ;;  %p3916_p1 = scmp.eq.s32.totalorder %s2864_s24, 0 }
  0x19   : > { %4895 = sst [smem:[#allocation19_spill]] %s3796_s23  ;;  %p278_p2 = scmp.ne.s32.totalorder %s3764_s15, %s3760_s14 }
  0x1a   : > { %p279_p3 = scmp.eq.s32.totalorder %s2864_s24, 3  ;;  %p3924_p4 = por %p3916_p1, %p64_p0 }
  0x1b   : > { %p284_p5 = scmp.ne.s32.totalorder %s3760_s14, %s3756_s13  ;;  %p285_p7 = scmp.eq.s32.totalorder %s2865_s25, 3 }
  0x1c   : > { %p3930_p6 = por %p279_p3, %p278_p2  ;;  %p2868_p8 = scmp.ge.s32.totalorder %s3796_s23, 1 }
  0x1d   : > { %p292_p9 = scmp.lt.s32.totalorder %s3796_s23, 5  ;;  %p3936_p10 = por %p285_p7, %p284_p5 }
  0x1e   : > { %s4898_s28 = scalar_select %p3930_p6, 1, 0 }
  0x1f   : > { %s4900_s29 = scalar_select %p3936_p10, 1, 0 }
  0x20   : > { %4899 = sst [smem:[#allocation20_spill]] %s4898_s28  ;;  %p3940_p11 = pnand %p2868_p8, %p292_p9 }
  0x21   : > { %4901 = sst [smem:[#allocation21_spill]] %s4900_s29  ;;  %s3798_s24 = smov [#allocation5]  }
  0x22   : > { %s4903_s1 = sld [smem:[#allocation23_spill]]  ;;  %p3417_p12 = pneg %p3940_p11 }
  0x23   : > { %s305_s25 = sshll.u32 %s3798_s24, 4  ;;  %s4905_s2 = sld [smem:[#allocation24_spill]]  ;;  %s306_s25 = int_to_ptr.vmem [resolvable:$true] %s305_s25 }
  0x24   : > { %p3951_p13 = pnand %p3417_p12, %p3916_p1  ;;  %s4873_s12 = smov 64  }
  0x25   : > { %s4906_s3 = sld [smem:[#allocation25_spill]]  ;;  %s3801_s29 = smov [#allocation7]  }
  0x26   : > { %s3802_s20 = smov [#allocation8]   ;;  %s37_s10 = sadd.s32 1, %s3788_s21 }
  0x27   : > { %p38_p0 = scmp.ge.s32.totalorder %s37_s10, 2  ;;  %s2866_s24 = sshll.u32 %s3792_s22, 1 }
  0x28   : > { %s303_s16 = sshll.u32 %s4903_s1, 4  ;;  %s4874_s1 = smov 4   ;;  %s304_s16 = int_to_ptr.hbm [resolvable:$true] %s303_s16 }
  0x29   : > { %s317_s11 = sshll.u32 %s4905_s2, 4  ;;  %s319_s2 = sshll.u32 %s3801_s29, 4  ;;  %s318_s11 = int_to_ptr.hbm [resolvable:$true] %s317_s11  ;;  %s320_s2 = int_to_ptr.vmem [resolvable:$true] %s319_s2 }
  0x2a   : > { %3420 = dma.hbm_to_vmem [thread:$0]  (!%p3951_p13), %s304_s16, 1024, %s306_s25, [#allocation6], %s4873_s12, %s4873_s12, %s4874_s1  }
  0x2b   : > { %s331_s28 = sshll.u32 %s4906_s3, 4  ;;  %s333_s16 = sshll.u32 %s3802_s20, 4  ;;  %s332_s28 = int_to_ptr.hbm [resolvable:$true] %s331_s28  ;;  %s334_s16 = int_to_ptr.vmem [resolvable:$true] %s333_s16 }
  0x2c   : > { %3423 = dma.hbm_to_vmem [thread:$0]  (!%p3951_p13), %s318_s11, 9216, %s320_s2, [#allocation6], %s4873_s12, %s4873_s12, %s4874_s1  }
  0x2d   : > { %3426 = dma.hbm_to_vmem [thread:$0]  (!%p3951_p13), %s332_s28, 1024, %s334_s16, [#allocation9], %s4873_s12, %s4873_s12, %s4874_s1  }
  0x2e   : > { %s40_s25 = sadd.s32 1, %s3792_s22  ;;  %s45_s29 = sadd.s32 %s3788_s21, %s2866_s24 }
  0x2f   : > { %s4949_s10 = smov (%p38_p0, %s37_s10), 0  ;;  %s4951_s25 = smov (!%p38_p0, %s40_s25), %s3792_s22 }
  0x30   : > { %p58_p2 = scmp.ne.s32.totalorder %s3776_s18, %s3772_s17  ;;  %p59_p3 = scmp.eq.s32.totalorder %s3796_s23, 0 }
  0x31   : > { %p42_p5 = scmp.ge.s32.totalorder %s4951_s25, 2  ;;  %s51_s2 = sadd.s32 1, %s3776_s18 }
  0x32   : > { %p3987_p7 = por %p59_p3, %p58_p2  ;;  %s264_s20 = ssub.s32 %s3788_s21, %s4949_s10 }
  0x33   : > { %s4953_s25 = smov (%p42_p5, %s4951_s25), 0  ;;  %s268_s11 = sadd.s32 1, %s3764_s15 }
  0x34   : > { %4908 = sst [smem:[#allocation22_spill]] %s4953_s25  ;;  %p3438_p8 = scmp.lt.s32.totalorder %s3796_s23, 4 }
  0x35   : > { %s2867_s28 = sshll.u32 %s4953_s25, 1  ;;  %s263_s16 = ssub.s32 %s3792_s22, %s4953_s25 }
  0x36   : > { %s47_s24 = sadd.s32 %s2867_s28, %s4949_s10  ;;  %s265_s12 = sor.u32 %s264_s20, %s263_s16 }
  0x37   : > { %s48_s1 = ssub.s32 %s45_s29, %s47_s24  ;;  %p266_p9 = scmp.eq.s32.totalorder %s265_s12, 0 }
  0x38   : > { %p49_p12 = scmp.eq.s32.totalorder %s48_s1, 0  ;;  %s365_s3 = sand.u32 1, %s3776_s18  }
  0x39   : > { %s4003_s9 = scalar_select %p266_p9, %s3764_s15, %s268_s11  }
  0x3a   : > { %s4006_s8 = scalar_select %p49_p12, %s3776_s18, %s51_s2  }
  0x3b   : > { %s3398_s14 = smul.u32 96, %s365_s3  ;;  %p3428_p13 = pnand %p3438_p8, %p3987_p7 }
  0x3c   : > { %s3399_s21 = smul.u32 96, %s45_s29  ;;  %s366_s12 = scalar_lea.sflag [#allocation3], %s365_s3 }
  0x3d   : > { %s369_s5 = scalar_lea.vmem [#allocation2], %s3398_s14  ;;  %s4909_s1 = smov 4  }
  0x3e   : > { %s376_s23 = scalar_lea.hbm %s4857_s0, %s3399_s21  ;;  %s379_s25 = sshll.u32 %s369_s5, 4  ;;  %s380_s25 = int_to_ptr.vmem [resolvable:$true] %s379_s25 }
  0x3f   : > { %s377_s28 = sshll.u32 %s376_s23, 4  ;;  %s4910_s20 = smov 64   ;;  %s378_s28 = int_to_ptr.hbm [resolvable:$true] %s377_s28 }
  0x40   : > { %3430 = dma.hbm_to_vmem [thread:$0]  (!%p3428_p13), %s378_s28, 1536, %s380_s25, %s366_s12, %s4910_s20, %s4910_s20, %s4909_s1  }
  0x41   : > { %391 = sbr.rel (%p3940_p11) target bundleno = 928 (0x3a0), region = 60  ;;  %s393_s29 = sand.u32 (!%p3940_p11), 1, %s3772_s17  }
  0x42   : > { %s3400_s2 = smul.u32 (!%p3940_p11), 96, %s393_s29  ;;  %s394_s13 = scalar_lea.sflag (!%p3940_p11), [#allocation3], %s393_s29 }
  0x44   : > { %s4019_s6 = scalar_lea.vmem (!%p3940_p11), [#allocation2], %s3400_s2 }
  0x46   : > { %3739 = dma.done.wait (%p3924_p4), %s394_s13, 1536  }
  0x47   : > { %3741 = vsyncadd (%p3924_p4), %s394_s13, 4294965760 }
  0x48   : > { %3743 = dma.done.wait (%p3916_p1), [#allocation6], 10240  }
  0x49   : > { %3745 = vsyncadd (%p3916_p1), [#allocation6], 4294957056 }
  0x4a   : > { %3747 = dma.done.wait (%p3916_p1), [#allocation9], 1024  }
  0x4b   : > { %3749 = vsyncadd (%p3916_p1), [#allocation9], 4294966272  ;;  %v3308_v0 = vld [vmem:[#allocation5 + $0x38] sm:$0xff]  ;;  %v3307_v1 = vld [vmem:[#allocation5 + $0x30] sm:$0xff]  ;;  %s2960_s3 = sshll.u32 %s3780_s19, 3  ;;  %s4911_s26 = sld [smem:[#allocation26_spill]]  ;;  %v738_v51 = vlaneseq }
  0x4c   : > { %613 = vmatpush.bf16.msra.mxu0 %v3308_v0  ;;  %v3306_v2 = vld [vmem:[#allocation5 + $0x28] sm:$0xff]  ;;  %v3305_v3 = vld [vmem:[#allocation5 + $0x20] sm:$0xff]  ;;  %v3304_v4 = vld [vmem:[#allocation5 + $0x18] sm:$0xff]  ;;  %s2961_s14 = sadd.s32 4294967294, %s2960_s3  ;;  %s4926_s28 = sld [smem:[#allocation27_spill]] }
  0x4d   : > { %v3303_v5 = vld [vmem:[#allocation5 + $0x10] sm:$0xff]  ;;  %v3302_v6 = vld [vmem:[#allocation5 + $0x8] sm:$0xff]  ;;  %v3301_v7 = vld [vmem:[#allocation5] sm:$0xff]  ;;  %v4054_v49 = vstv %s2961_s14  ;;  %v4063_v54 = vshrl.u32 %v738_v51, 7  ;;  %s4927_s20 = sld [smem:[#allocation28_spill]]  ;;  %s3389_s25 = sshll.u32 %s3780_s19, 4 }
  0x4e   : > { %v3289_v8 = vld [vmem:[%s4019_s6] sm:$0xff]  ;;  %v3290_v9 = vld [vmem:[%s4019_s6 + $0x8] sm:$0xff]  ;;  %v3291_v10 = vld [vmem:[%s4019_s6 + $0x10] sm:$0xff]  ;;  %vm755_vm0 = vcmp.ge.s32.totalorder %v4054_v49, 0  ;;  %vm767_vm1 = vcmp.lt.s32.totalorder %v4054_v49, 16  ;;  %v744_v62 = vadd.s32 1, %v4054_v49 }
  0x4f   : > { %v3292_v11 = vld [vmem:[%s4019_s6 + $0x18] sm:$0xff]  ;;  %v3293_v13 = vld [vmem:[%s4019_s6 + $0x20] sm:$0xff]  ;;  %v3294_v14 = vld [vmem:[%s4019_s6 + $0x28] sm:$0xff]  ;;  %v4070_v60 = vadd.s32 8, %v4063_v54  ;;  %vm913_vm3 = vcmp.lt.s32.totalorder %v4063_v54, 2  ;;  %vm1016_vm4 = vcmp.lt.s32.totalorder %v4063_v54, 6 }
  0x50   : > { %614 = vmatpush.bf16.msra.mxu0 %v3307_v1  ;;  %v3364_v12 = vld [vmem:[#allocation7 + $0x1b8] sm:$0xff]  ;;  %v3363_v15 = vld [vmem:[#allocation7 + $0x1b0] sm:$0xff]  ;;  %v3322_v22 = vld [vmem:[#allocation7 + $0x68] sm:$0xff]  ;;  %vm887_vm5 = vcmp.ge.s32.totalorder %v4063_v54, 2  ;;  %vm756_vm7 = vcmp.ge.s32.totalorder %v744_v62, 0  ;;  %vm768_vm8 = vcmp.lt.s32.totalorder %v744_v62, 16 }
  0x51   : > { %v3324_v16 = vld [vmem:[#allocation7 + $0x78] sm:$0xff]  ;;  %v3323_v19 = vld [vmem:[#allocation7 + $0x70] sm:$0xff]  ;;  %v3321_v24 = vld [vmem:[#allocation7 + $0x60] sm:$0xff]  ;;  %vm991_vm6 = vcmp.lt.s32.totalorder %v4070_v60, 14  ;;  %s4928_s29 = sld [smem:[#allocation16_spill]] }
  0x52   : > { %v3316_v17 = vld [vmem:[#allocation7 + $0x38] sm:$0xff]  ;;  %1222 = vmatpush.bf16.msra.mxu1 %v3324_v16  ;;  %v3315_v20 = vld [vmem:[#allocation7 + $0x30] sm:$0xff]  ;;  %v3314_v25 = vld [vmem:[#allocation7 + $0x28] sm:$0xff]  ;;  %s4929_s3 = sld [smem:[#allocation29_spill]] }
  0x53   : > { %v3332_v18 = vld [vmem:[#allocation7 + $0xb8] sm:$0xff]  ;;  %1367 = vmatpush.bf16.msra.mxu2 %v3316_v17  ;;  %v3331_v21 = vld [vmem:[#allocation7 + $0xb0] sm:$0xff]  ;;  %v3330_v26 = vld [vmem:[#allocation7 + $0xa8] sm:$0xff]  ;;  %s4930_s14 = sld [smem:[#allocation30_spill]] }
  0x54   : > { %615 = vmatpush.bf16.msra.mxu0 %v3306_v2  ;;  %1529 = vmatpush.bf16.msra.mxu3 %v3332_v18  ;;  %v3295_v23 = vld [vmem:[%s4019_s6 + $0x30] sm:$0xff]  ;;  %v3320_v27 = vld [vmem:[#allocation7 + $0x58] sm:$0xff]  ;;  %v3313_v28 = vld [vmem:[#allocation7 + $0x20] sm:$0xff]  ;;  %s4931_s30 = sld [smem:[#allocation17_spill]] }
  0x55   : > { %v3329_v29 = vld [vmem:[#allocation7 + $0xa0] sm:$0xff]  ;;  %v3319_v30 = vld [vmem:[#allocation7 + $0x50] sm:$0xff]  ;;  %v3312_v31 = vld [vmem:[#allocation7 + $0x18] sm:$0xff]  ;;  %s4932_s12 = sld [smem:[#allocation31_spill]] }
  0x56   : > { %1223 = vmatpush.bf16.msra.mxu1 %v3323_v19  ;;  %v3328_v32 = vld [vmem:[#allocation7 + $0x98] sm:$0xff]  ;;  %v3362_v33 = vld [vmem:[#allocation7 + $0x1a8] sm:$0xff]  ;;  %v3311_v35 = vld [vmem:[#allocation7 + $0x10] sm:$0xff] }
  0x57   : > { %1368 = vmatpush.bf16.msra.mxu2 %v3315_v20  ;;  %v3318_v34 = vld [vmem:[#allocation7 + $0x48] sm:$0xff]  ;;  %v3327_v36 = vld [vmem:[#allocation7 + $0x90] sm:$0xff]  ;;  %v3296_v37 = vld [vmem:[%s4019_s6 + $0x38] sm:$0xff]  ;;  %s447_s21 = sand.u32 1, %s4928_s29  }
  0x58   : > { %616 = vmatpush.bf16.msra.mxu0 %v3305_v3  ;;  %1530 = vmatpush.bf16.msra.mxu3 %v3331_v21  ;;  %v3317_v38 = vld [vmem:[#allocation7 + $0x40] sm:$0xff]  ;;  %v3310_v39 = vld [vmem:[#allocation7 + $0x8] sm:$0xff]  ;;  %v3348_v44 = vld [vmem:[#allocation7 + $0x138] sm:$0xff]  ;;  %s2879_s23 = sshll.u32 %s447_s21, 7  ;;  %s2728_s13 = scalar_lea.sflag [#allocation4], %s447_s21 }
  0x59   : > { %v3326_v40 = vld [vmem:[#allocation7 + $0x88] sm:$0xff]  ;;  %v3309_v41 = vld [vmem:[#allocation7] sm:$0xff]  ;;  %vm4059_vm2 = vmand %vm755_vm0, %vm767_vm1  ;;  %s4747_s27 = scalar_lea.vmem [#allocation10], %s2879_s23 }
  0x5a   : > { %1224 = vmatpush.bf16.msra.mxu1 %v3322_v22  ;;  %v3325_v42 = vld [vmem:[#allocation7 + $0x80] sm:$0xff]  ;;  %v3347_v0 = vld [vmem:[#allocation7 + $0x130] sm:$0xff]  ;;  %v3340_v1 = vld [vmem:[#allocation7 + $0xf8] sm:$0xff]  ;;  %s3285_s11 = sshll.u32 %s4931_s30, 5 }
  0x5b   : > { %1369 = vmatpush.bf16.msra.mxu2 %v3314_v25  ;;  %v4045_v43 = vld [vmem:[%s4861_s4] ss:$0 sm:$0xff]  ;;  %v3298_v3 = vld [vmem:[%s4019_s6 + $0x48] sm:$0xff]  ;;  %vm4096_vm9 = vmand %vm756_vm7, %vm768_vm8  ;;  %s2740_s16 = sadd.s32 %s3389_s25, %s3285_s11  ;;  %s3686_s23 = scalar_lea.hbm %s4932_s12, 512 }
  0x5c   : > { %617 = vmatpush.bf16.msra.mxu0 %v3304_v4  ;;  %1531 = vmatpush.bf16.msra.mxu3 %v3330_v26  ;;  %v4050_v45 = vld [vmem:[%s4911_s26] ss:$0 sm:$0xff]  ;;  %s3286_s24 = sshll.u32 %s2740_s16, 3 }
  0x5d   : > { %v3297_v46 = vld [vmem:[%s4019_s6 + $0x40] sm:$0xff]  ;;  %s2742_s19 = scalar_lea.hbm %s4932_s12, %s3286_s24 }
  0x5e   : > { %1225 = vmatpush.bf16.msra.mxu1 %v3321_v24  ;;  %v3361_v56 = vld [vmem:[#allocation7 + $0x1a0] sm:$0xff]  ;;  %s2745_s2 = sshll.u32 %s2742_s19, 4  ;;  %s2746_s2 = int_to_ptr.hbm [resolvable:$true] %s2745_s2 }
  0x5f   : > { %1370 = vmatpush.bf16.msra.mxu2 %v3313_v28 }
  0x60   : > { %618 = vmatpush.bf16.msra.mxu0 %v3303_v5  ;;  %1532 = vmatpush.bf16.msra.mxu3 %v3329_v29 }
  0x62   : > { %1226 = vmatpush.bf16.msra.mxu1 %v3320_v27 }
  0x63   : > { %1371 = vmatpush.bf16.msra.mxu2 %v3312_v31 }
  0x64   : > { %619 = vmatpush.bf16.msra.mxu0 %v3302_v6  ;;  %1533 = vmatpush.bf16.msra.mxu3 %v3328_v32 }
  0x66   : > { %1227 = vmatpush.bf16.msra.mxu1 %v3319_v30 }
  0x67   : > { %1372 = vmatpush.bf16.msra.mxu2 %v3311_v35 }
  0x68   : > { %620 = vmatpush.bf16.msra.mxu0 %v3301_v7  ;;  %1534 = vmatpush.bf16.msra.mxu3 %v3327_v36 }
  0x6a   : > { %1228 = vmatpush.bf16.msra.mxu1 %v3318_v34 }
  0x6b   : > { %621 = vmatmul.bf16.vlgmr.msra.gmra.mxu0 %v3289_v8  ;;  %1373 = vmatpush.bf16.msra.mxu2 %v3310_v39 }
  0x6c   : > { %2097 = vmatpush.bf16.msrb.mxu0 %v3364_v12  ;;  %1535 = vmatpush.bf16.msra.mxu3 %v3326_v40  ;;  %v3346_v40 = vld [vmem:[#allocation7 + $0x128] sm:$0xff] }
  0x6e   : > { %1229 = vmatpush.bf16.msra.mxu1 %v3317_v38  ;;  %v745_v38 = vadd.s32 2, %v4054_v49 }
  0x6f   : > { %1374 = vmatpush.bf16.msra.mxu2 %v3309_v41  ;;  %v3339_v41 = vld [vmem:[#allocation7 + $0xf0] sm:$0xff] }
  0x70   : > { %2098 = vmatpush.bf16.msrb.mxu0 %v3363_v15  ;;  %1536 = vmatpush.bf16.msra.mxu3 %v3325_v42  ;;  %v3360_v42 = vld [vmem:[#allocation7 + $0x198] sm:$0xff]  ;;  %vm757_vm10 = vcmp.ge.s32.totalorder %v745_v38, 0  ;;  %vm769_vm11 = vcmp.lt.s32.totalorder %v745_v38, 16 }
  0x71   : > { %vm4124_vm12 = vmand %vm757_vm10, %vm769_vm11 }
  0x72   : > { %1671 = vmatpush.bf16.msrb.mxu1 %v3340_v1 }
  0x73   : > { %1813 = vmatpush.bf16.msrb.mxu2 %v3348_v44 }
  0x74   : > { %2099 = vmatpush.bf16.msrb.mxu0 %v3362_v33 }
  0x76   : > { %1672 = vmatpush.bf16.msrb.mxu1 %v3339_v41 }
  0x77   : > { %1814 = vmatpush.bf16.msrb.mxu2 %v3347_v0 }
  0x78   : > { %2100 = vmatpush.bf16.msrb.mxu0 %v3361_v56 }
  0x7b   : > { %626 = vmatmul.bf16.gmra.mxu0 %v3290_v9  ;;  %1815 = vmatpush.bf16.msrb.mxu2 %v3346_v40 }
  0x7c   : > { %2101 = vmatpush.bf16.msrb.mxu0 %v3360_v42 }
  0x8b   : > { %631 = vmatmul.bf16.gmra.mxu0 %v3291_v10 }
  0x9b   : > { %636 = vmatmul.bf16.gmra.mxu0 %v3292_v11 }
  0xab   : > { %641 = vmatmul.bf16.gmra.mxu0 %v3293_v13 }
  0xbb   : > { %646 = vmatmul.bf16.gmra.mxu0 %v3294_v14 }
  0xcb   : > { %651 = vmatmul.bf16.gmra.mxu0 %v3295_v23 }
  0xdb   : > { %656 = vmatmul.bf16.gmra.mxu0 %v3296_v37 }
  0xe8   : > { %v622_v47 = vpop.f32.mrf.mxu0 }
  0xe9   : > { %v686_v48 = vmul.f32 %v4045_v43, %v622_v47 }
  0xeb   : > { %v714_v50 = vadd.f32 %v4050_v45, %v686_v48  ;;  %661 = vmatmul.bf16.gmra.mxu0 %v3297_v46  ;;  %v3299_v46 = vld [vmem:[%s4019_s6 + $0x50] sm:$0xff] }
  0xed   : > { %v791_v52 = vmax.f32 %v714_v50, 0.0 }
  0xef   : > { %v839_v58 = vsel %vm4059_vm2, %v791_v52, 0.0 }
  0xf0   : > { %v624_v55 = vpop.f32.mrf.mxu0  ;;  %v863_v63 = vpack.c.bf16 %v839_v58, %v839_v58  ;;  %v889_v2 = vrot.slane %v839_v58, 6  ;;  %v992_v5 = vrot.slane %v839_v58, 2 }
  0xf1   : > { %v687_v57 = vmul.f32 %v4045_v43, %v624_v55 }
  0xf2   : > { %v1142_v11 = vunpack.c.l.b16 %v863_v63 }
  0xf3   : > { %v715_v59 = vadd.f32 %v4050_v45, %v687_v57 }
  0xf5   : > { %v792_v61 = vmax.f32 %v715_v59, 0.0 }
  0xf7   : > { %v840_v4 = vsel %vm4059_vm2, %v792_v61, 0.0 }
  0xf8   : > { %v627_v6 = vpop.f32.mrf.mxu0  ;;  %v864_v7 = vpack.c.bf16 %v840_v4, %v840_v4  ;;  %v901_v8 = vrot.slane %v840_v4, 6  ;;  %v1004_v9 = vrot.slane %v840_v4, 2 }
  0xf9   : > { %v688_v10 = vmul.f32 %v4045_v43, %v627_v6 }
  0xfa   : > { %v1143_v12 = vunpack.c.l.b16 %v864_v7  ;;  %v914_v13 = vsel %vm913_vm3, %v889_v2, %v901_v8  ;;  %v926_v14 = vsel %vm913_vm3, %v901_v8, %v889_v2  ;;  %v1017_v15 = vsel %vm1016_vm4, %v992_v5, %v1004_v9 }
  0xfb   : > { %v716_v16 = vadd.f32 %v4050_v45, %v688_v10  ;;  %666 = vmatmul.bf16.gmra.mxu0 %v3298_v3  ;;  %v942_v17 = vsel %vm887_vm5, %v926_v14, 0.0  ;;  %v967_v18 = vpack.c.bf16 %v914_v13, %v914_v13  ;;  %v1029_v19 = vsel %vm1016_vm4, %v1004_v9, %v992_v5 }
  0xfc   : > { %v1158_v20 = vpack.c.b16 %v1143_v12, %v1142_v11  ;;  %v966_v21 = vpack.c.bf16 %v942_v17, %v942_v17  ;;  %v1046_v22 = vsel %vm991_vm6, %v1029_v19, 0.0  ;;  %v1069_v23 = vpack.c.bf16 %v1017_v15, %v1017_v15 }
  0xfd   : > { %v1288_v24 = vunpack.c.l.b16 %v967_v18  ;;  %v1070_v25 = vpack.c.bf16 %v1046_v22, %v1046_v22  ;;  %v793_v26 = vmax.f32 %v716_v16, 0.0  ;;  %v3359_v22 = vld [vmem:[#allocation7 + $0x190] sm:$0xff] }
  0xfe   : > { %1230 = vmatmul.bf16.vlgmr.msra.gmra.mxu1 %v1158_v20  ;;  %v1287_v27 = vunpack.c.l.b16 %v966_v21  ;;  %v1449_v28 = vunpack.c.l.b16 %v1069_v23  ;;  %v746_v20 = vadd.s32 3, %v4054_v49  ;;  %2102 = vmatpush.bf16.msrb.mxu0 %v3359_v22 }
  0xff   : > { %v1450_v30 = vunpack.c.l.b16 %v1070_v25  ;;  %v841_v35 = vsel %vm4096_vm9, %v793_v26, 0.0 }
 0x100   : > { %v629_v31 = vpop.f32.mrf.mxu0  ;;  %v1303_v32 = vpack.c.b16 %v1288_v24, %v1287_v27  ;;  %v865_v39 = vpack.c.bf16 %v841_v35, %v841_v35  ;;  %v890_v44 = vrot.slane %v841_v35, 6  ;;  %v993_v48 = vrot.slane %v841_v35, 2  ;;  %v3300_v24 = vld [vmem:[%s4019_s6 + $0x58] sm:$0xff] }
 0x101   : > { %v689_v33 = vmul.f32 %v4045_v43, %v629_v31  ;;  %v1465_v34 = vpack.c.b16 %v1450_v30, %v1449_v28  ;;  %v3345_v31 = vld [vmem:[#allocation7 + $0x120] sm:$0xff]  ;;  %vm758_vm13 = vcmp.ge.s32.totalorder %v746_v20, 0  ;;  %vm770_vm14 = vcmp.lt.s32.totalorder %v746_v20, 16 }
 0x102   : > { %1375 = vmatmul.bf16.vlgmr.msra.gmra.mxu2 %v1303_v32  ;;  %v1144_v56 = vunpack.c.l.b16 %v865_v39  ;;  %v3338_v32 = vld [vmem:[#allocation7 + $0xe8] sm:$0xff]  ;;  %vm782_vm15 = vmand %vm758_vm13, %vm770_vm14 }
 0x103   : > { %v717_v36 = vadd.f32 %v4050_v45, %v689_v33  ;;  %1537 = vmatmul.bf16.vlgmr.msra.gmra.mxu3 %v1465_v34  ;;  %1816 = vmatpush.bf16.msrb.mxu2 %v3345_v31  ;;  %v3358_v39 = vld [vmem:[#allocation7 + $0x188] sm:$0xff] }
 0x104   : > { %1673 = vmatpush.bf16.msrb.mxu1 %v3338_v32  ;;  %2103 = vmatpush.bf16.msrb.mxu0 %v3358_v39 }
 0x105   : > { %v794_v37 = vmax.f32 %v717_v36, 0.0 }
 0x107   : > { %v842_v47 = vsel %vm4096_vm9, %v794_v37, 0.0 }
 0x108   : > { %v632_v50 = vpop.f32.mrf.mxu0  ;;  %v866_v51 = vpack.c.bf16 %v842_v47, %v842_v47  ;;  %v902_v52 = vrot.slane %v842_v47, 6  ;;  %v1005_v53 = vrot.slane %v842_v47, 2 }
 0x109   : > { %v690_v55 = vmul.f32 %v4045_v43, %v632_v50 }
 0x10a   : > { %v1145_v57 = vunpack.c.l.b16 %v866_v51  ;;  %v915_v58 = vsel %vm913_vm3, %v890_v44, %v902_v52  ;;  %v927_v59 = vsel %vm913_vm3, %v902_v52, %v890_v44  ;;  %v1018_v61 = vsel %vm1016_vm4, %v993_v48, %v1005_v53 }
 0x10b   : > { %v718_v62 = vadd.f32 %v4050_v45, %v690_v55  ;;  %671 = vmatmul.bf16.gmra.mxu0 %v3299_v46  ;;  %v944_v63 = vsel %vm887_vm5, %v927_v59, 0.0  ;;  %v969_v0 = vpack.c.bf16 %v915_v58, %v915_v58  ;;  %v1030_v1 = vsel %vm1016_vm4, %v1005_v53, %v993_v48 }
 0x10c   : > { %v1159_v2 = vpack.c.b16 %v1145_v57, %v1144_v56  ;;  %v968_v3 = vpack.c.bf16 %v944_v63, %v944_v63  ;;  %v1048_v4 = vsel %vm991_vm6, %v1030_v1, 0.0  ;;  %v1071_v5 = vpack.c.bf16 %v1018_v61, %v1018_v61  ;;  %v3357_v57 = vld [vmem:[#allocation7 + $0x180] sm:$0xff] }
 0x10d   : > { %v1290_v6 = vunpack.c.l.b16 %v969_v0  ;;  %v1072_v7 = vpack.c.bf16 %v1048_v4, %v1048_v4  ;;  %v795_v8 = vmax.f32 %v718_v62, 0.0  ;;  %2104 = vmatpush.bf16.msrb.mxu0 %v3357_v57 }
 0x10e   : > { %1235 = vmatmul.bf16.gmra.mxu1 %v1159_v2  ;;  %v1289_v9 = vunpack.c.l.b16 %v968_v3  ;;  %v1451_v10 = vunpack.c.l.b16 %v1071_v5  ;;  %v747_v3 = vadd.s32 4, %v4054_v49 }
 0x10f   : > { %v1452_v12 = vunpack.c.l.b16 %v1072_v7  ;;  %v843_v17 = vsel %vm4124_vm12, %v795_v8, 0.0 }
 0x110   : > { %v634_v13 = vpop.f32.mrf.mxu0  ;;  %v1304_v14 = vpack.c.b16 %v1290_v6, %v1289_v9  ;;  %v867_v21 = vpack.c.bf16 %v843_v17, %v843_v17  ;;  %v891_v23 = vrot.slane %v843_v17, 6  ;;  %v994_v26 = vrot.slane %v843_v17, 2 }
 0x111   : > { %v691_v15 = vmul.f32 %v4045_v43, %v634_v13  ;;  %v1466_v16 = vpack.c.b16 %v1452_v12, %v1451_v10  ;;  %v3344_v12 = vld [vmem:[#allocation7 + $0x118] sm:$0xff]  ;;  %v3337_v13 = vld [vmem:[#allocation7 + $0xe0] sm:$0xff]  ;;  %vm759_vm0 = vcmp.ge.s32.totalorder %v747_v3, 0  ;;  %vm771_vm1 = vcmp.lt.s32.totalorder %v747_v3, 16 }
 0x112   : > { %1380 = vmatmul.bf16.gmra.mxu2 %v1304_v14  ;;  %v1146_v34 = vunpack.c.l.b16 %v867_v21  ;;  %1674 = vmatpush.bf16.msrb.mxu1 %v3337_v13  ;;  %vm783_vm2 = vmand %vm759_vm0, %vm771_vm1 }
 0x113   : > { %v719_v18 = vadd.f32 %v4050_v45, %v691_v15  ;;  %1542 = vmatmul.bf16.gmra.mxu3 %v1466_v16  ;;  %1817 = vmatpush.bf16.msrb.mxu2 %v3344_v12 }
 0x115   : > { %v796_v19 = vmax.f32 %v719_v18, 0.0 }
 0x117   : > { %v844_v25 = vsel %vm4124_vm12, %v796_v19, 0.0 }
 0x118   : > { %v637_v27 = vpop.f32.mrf.mxu0  ;;  %v868_v28 = vpack.c.bf16 %v844_v25, %v844_v25  ;;  %v903_v29 = vrot.slane %v844_v25, 6  ;;  %v1006_v30 = vrot.slane %v844_v25, 2 }
 0x119   : > { %v692_v33 = vmul.f32 %v4045_v43, %v637_v27 }
 0x11a   : > { %v1147_v35 = vunpack.c.l.b16 %v868_v28  ;;  %v916_v36 = vsel %vm913_vm3, %v891_v23, %v903_v29  ;;  %v928_v37 = vsel %vm913_vm3, %v903_v29, %v891_v23  ;;  %v1019_v38 = vsel %vm1016_vm4, %v994_v26, %v1006_v30 }
 0x11b   : > { %v720_v40 = vadd.f32 %v4050_v45, %v692_v33  ;;  %676 = vmatmul.bf16.gmra.mxu0 %v3300_v24  ;;  %v946_v41 = vsel %vm887_vm5, %v928_v37, 0.0  ;;  %v971_v42 = vpack.c.bf16 %v916_v36, %v916_v36  ;;  %v1031_v44 = vsel %vm1016_vm4, %v1006_v30, %v994_v26 }
 0x11c   : > { %v4148_v46 = vpack.c.b16 %v1147_v35, %v1146_v34  ;;  %v970_v47 = vpack.c.bf16 %v946_v41, %v946_v41  ;;  %v1050_v48 = vsel %vm991_vm6, %v1031_v44, 0.0  ;;  %v1073_v50 = vpack.c.bf16 %v1019_v38, %v1019_v38 }
 0x11d   : > { %v1292_v51 = vunpack.c.l.b16 %v971_v42  ;;  %v1074_v52 = vpack.c.bf16 %v1050_v48, %v1050_v48  ;;  %v797_v53 = vmax.f32 %v720_v40, 0.0  ;;  %v748_v41 = vadd.s32 5, %v4054_v49 }
 0x11e   : > { %1240 = vmatmul.bf16.gmra.mxu1 %v4148_v46  ;;  %v1291_v55 = vunpack.c.l.b16 %v970_v47  ;;  %v1453_v56 = vunpack.c.l.b16 %v1073_v50 }
 0x11f   : > { %v1454_v58 = vunpack.c.l.b16 %v1074_v52  ;;  %v845_v0 = vsel %vm782_vm15, %v797_v53, 0.0  ;;  %vm760_vm7 = vcmp.ge.s32.totalorder %v748_v41, 0  ;;  %vm772_vm8 = vcmp.lt.s32.totalorder %v748_v41, 16 }
 0x120   : > { %v639_v59 = vpop.f32.mrf.mxu0  ;;  %v4155_v61 = vpack.c.b16 %v1292_v51, %v1291_v55  ;;  %v869_v4 = vpack.c.bf16 %v845_v0, %v845_v0  ;;  %v892_v5 = vrot.slane %v845_v0, 6  ;;  %v995_v7 = vrot.slane %v845_v0, 2  ;;  %v3343_v55 = vld [vmem:[#allocation7 + $0x110] sm:$0xff]  ;;  %vm4211_vm9 = vmand %vm760_vm7, %vm772_vm8 }
 0x121   : > { %v693_v62 = vmul.f32 %v4045_v43, %v639_v59  ;;  %v4158_v63 = vpack.c.b16 %v1454_v58, %v1453_v56  ;;  %v3336_v56 = vld [vmem:[#allocation7 + $0xd8] sm:$0xff]  ;;  %1818 = vmatpush.bf16.msrb.mxu2 %v3343_v55 }
 0x122   : > { %1385 = vmatmul.bf16.gmra.mxu2 %v4155_v61  ;;  %v1148_v15 = vunpack.c.l.b16 %v869_v4  ;;  %1675 = vmatpush.bf16.msrb.mxu1 %v3336_v56 }
 0x123   : > { %v721_v1 = vadd.f32 %v4050_v45, %v693_v62  ;;  %1547 = vmatmul.bf16.gmra.mxu3 %v4158_v63 }
 0x125   : > { %v798_v2 = vmax.f32 %v721_v1, 0.0 }
 0x127   : > { %v846_v6 = vsel %vm782_vm15, %v798_v2, 0.0 }
 0x128   : > { %v642_v8 = vpop.f32.mrf.mxu0  ;;  %v870_v9 = vpack.c.bf16 %v846_v6, %v846_v6  ;;  %v904_v10 = vrot.slane %v846_v6, 6  ;;  %v1007_v11 = vrot.slane %v846_v6, 2 }
 0x129   : > { %v694_v14 = vmul.f32 %v4045_v43, %v642_v8 }
 0x12a   : > { %v1149_v16 = vunpack.c.l.b16 %v870_v9  ;;  %v917_v17 = vsel %vm913_vm3, %v892_v5, %v904_v10  ;;  %v929_v18 = vsel %vm913_vm3, %v904_v10, %v892_v5  ;;  %v1020_v19 = vsel %vm1016_vm4, %v995_v7, %v1007_v11 }
 0x12b   : > { %v722_v20 = vadd.f32 %v4050_v45, %v694_v14  ;;  %v948_v21 = vsel %vm887_vm5, %v929_v18, 0.0  ;;  %v973_v22 = vpack.c.bf16 %v917_v17, %v917_v17  ;;  %v1032_v23 = vsel %vm1016_vm4, %v1007_v11, %v995_v7 }
 0x12c   : > { %v4176_v24 = vpack.c.b16 %v1149_v16, %v1148_v15  ;;  %v972_v25 = vpack.c.bf16 %v948_v21, %v948_v21  ;;  %v1052_v26 = vsel %vm991_vm6, %v1032_v23, 0.0  ;;  %v1075_v27 = vpack.c.bf16 %v1020_v19, %v1020_v19 }
 0x12d   : > { %v1294_v28 = vunpack.c.l.b16 %v973_v22  ;;  %v1076_v29 = vpack.c.bf16 %v1052_v26, %v1052_v26  ;;  %v799_v30 = vmax.f32 %v722_v20, 0.0  ;;  %v3356_v22 = vld [vmem:[#allocation7 + $0x178] sm:$0xff]  ;;  %v749_v26 = vadd.s32 6, %v4054_v49 }
 0x12e   : > { %1245 = vmatmul.bf16.gmra.mxu1 %v4176_v24  ;;  %v1293_v31 = vunpack.c.l.b16 %v972_v25  ;;  %v1455_v32 = vunpack.c.l.b16 %v1075_v27  ;;  %1955 = vmatpush.bf16.msrb.mxu3 %v3356_v22 }
 0x12f   : > { %v1456_v33 = vunpack.c.l.b16 %v1076_v29  ;;  %v847_v38 = vsel %vm783_vm2, %v799_v30, 0.0  ;;  %vm761_vm10 = vcmp.ge.s32.totalorder %v749_v26, 0  ;;  %vm773_vm11 = vcmp.lt.s32.totalorder %v749_v26, 16 }
 0x130   : > { %v644_v34 = vpop.f32.mrf.mxu0  ;;  %v4183_v35 = vpack.c.b16 %v1294_v28, %v1293_v31  ;;  %v871_v42 = vpack.c.bf16 %v847_v38, %v847_v38  ;;  %v893_v44 = vrot.slane %v847_v38, 6  ;;  %v996_v48 = vrot.slane %v847_v38, 2  ;;  %v3355_v28 = vld [vmem:[#allocation7 + $0x170] sm:$0xff]  ;;  %v3342_v38 = vld [vmem:[#allocation7 + $0x108] sm:$0xff]  ;;  %vm4248_vm12 = vmand %vm761_vm10, %vm773_vm11 }
 0x131   : > { %v695_v36 = vmul.f32 %v4045_v43, %v644_v34  ;;  %v4186_v37 = vpack.c.b16 %v1456_v33, %v1455_v32  ;;  %1819 = vmatpush.bf16.msrb.mxu2 %v3342_v38 }
 0x132   : > { %1390 = vmatmul.bf16.gmra.mxu2 %v4183_v35  ;;  %v1150_v58 = vunpack.c.l.b16 %v871_v42  ;;  %1956 = vmatpush.bf16.msrb.mxu3 %v3355_v28 }
 0x133   : > { %v723_v39 = vadd.f32 %v4050_v45, %v695_v36  ;;  %1552 = vmatmul.bf16.gmra.mxu3 %v4186_v37 }
 0x135   : > { %v800_v40 = vmax.f32 %v723_v39, 0.0  ;;  %v3335_v39 = vld [vmem:[#allocation7 + $0xd0] sm:$0xff] }
 0x136   : > { %1676 = vmatpush.bf16.msrb.mxu1 %v3335_v39  ;;  %v3333_v39 = vld [vmem:[#allocation7 + $0xc0] sm:$0xff] }
 0x137   : > { %v848_v47 = vsel %vm783_vm2, %v800_v40, 0.0 }
 0x138   : > { %v905_v50 = vrot.slane %v848_v47, 6  ;;  %v1008_v51 = vrot.slane %v848_v47, 2  ;;  %v647_v52 = vpop.f32.mrf.mxu0  ;;  %v872_v53 = vpack.c.bf16 %v848_v47, %v848_v47 }
 0x139   : > { %v696_v57 = vmul.f32 %v4045_v43, %v647_v52 }
 0x13a   : > { %v1151_v59 = vunpack.c.l.b16 %v872_v53  ;;  %v918_v62 = vsel %vm913_vm3, %v893_v44, %v905_v50  ;;  %v930_v0 = vsel %vm913_vm3, %v905_v50, %v893_v44  ;;  %v1021_v1 = vsel %vm1016_vm4, %v996_v48, %v1008_v51  ;;  %v3354_v50 = vld [vmem:[#allocation7 + $0x168] sm:$0xff] }
 0x13b   : > { %v724_v2 = vadd.f32 %v4050_v45, %v696_v57  ;;  %v950_v3 = vsel %vm887_vm5, %v930_v0, 0.0  ;;  %v975_v4 = vpack.c.bf16 %v918_v62, %v918_v62  ;;  %v1033_v5 = vsel %vm1016_vm4, %v1008_v51, %v996_v48  ;;  %1957 = vmatpush.bf16.msrb.mxu3 %v3354_v50 }
 0x13c   : > { %v4204_v6 = vpack.c.b16 %v1151_v59, %v1150_v58  ;;  %v974_v7 = vpack.c.bf16 %v950_v3, %v950_v3  ;;  %v1054_v8 = vsel %vm991_vm6, %v1033_v5, 0.0  ;;  %v1077_v9 = vpack.c.bf16 %v1021_v1, %v1021_v1 }
 0x13d   : > { %v1296_v10 = vunpack.c.l.b16 %v975_v4  ;;  %v1078_v11 = vpack.c.bf16 %v1054_v8, %v1054_v8  ;;  %v801_v12 = vmax.f32 %v724_v2, 0.0  ;;  %v3353_v4 = vld [vmem:[#allocation7 + $0x160] sm:$0xff] }
 0x13e   : > { %1250 = vmatmul.bf16.gmra.mxu1 %v4204_v6  ;;  %v1295_v13 = vunpack.c.l.b16 %v974_v7  ;;  %v1457_v14 = vunpack.c.l.b16 %v1077_v9 }
 0x13f   : > { %v1458_v16 = vunpack.c.l.b16 %v1078_v11  ;;  %v849_v21 = vsel %vm4211_vm9, %v801_v12, 0.0  ;;  %1958 = vmatpush.bf16.msrb.mxu3 %v3353_v4 }
 0x140   : > { %v649_v17 = vpop.f32.mrf.mxu0  ;;  %v4215_v18 = vpack.c.b16 %v1296_v10, %v1295_v13  ;;  %v873_v27 = vpack.c.bf16 %v849_v21, %v849_v21  ;;  %v894_v29 = vrot.slane %v849_v21, 6  ;;  %v997_v31 = vrot.slane %v849_v21, 2  ;;  %v3352_v13 = vld [vmem:[#allocation7 + $0x158] sm:$0xff]  ;;  %v3351_v21 = vld [vmem:[#allocation7 + $0x150] sm:$0xff] }
 0x141   : > { %v697_v19 = vmul.f32 %v4045_v43, %v649_v17  ;;  %v4218_v20 = vpack.c.b16 %v1458_v16, %v1457_v14  ;;  %v750_v16 = vadd.s32 7, %v4054_v49 }
 0x142   : > { %1395 = vmatmul.bf16.gmra.mxu2 %v4215_v18  ;;  %2105 = vmatmul.bf16.vlgmr.msrb.gmra.mxu0 %v4215_v18  ;;  %v1152_v41 = vunpack.c.l.b16 %v873_v27 }
 0x143   : > { %v725_v23 = vadd.f32 %v4050_v45, %v697_v19  ;;  %1557 = vmatmul.bf16.gmra.mxu3 %v4218_v20  ;;  %v3334_v19 = vld [vmem:[#allocation7 + $0xc8] sm:$0xff]  ;;  %vm762_vm13 = vcmp.ge.s32.totalorder %v750_v16, 0  ;;  %vm774_vm14 = vcmp.lt.s32.totalorder %v750_v16, 16 }
 0x144   : > { %1959 = vmatpush.bf16.msrb.mxu3 %v3352_v13  ;;  %1677 = vmatpush.bf16.msrb.mxu1 %v3334_v19  ;;  %vm786_vm15 = vmand %vm762_vm13, %vm774_vm14 }
 0x145   : > { %v802_v25 = vmax.f32 %v725_v23, 0.0 }
 0x147   : > { %v850_v30 = vsel %vm4211_vm9, %v802_v25, 0.0 }
 0x148   : > { %v906_v32 = vrot.slane %v850_v30, 6  ;;  %v1009_v33 = vrot.slane %v850_v30, 2  ;;  %v652_v34 = vpop.f32.mrf.mxu0  ;;  %v874_v36 = vpack.c.bf16 %v850_v30, %v850_v30  ;;  %v3341_v30 = vld [vmem:[#allocation7 + $0x100] sm:$0xff]  ;;  %1960 = vmatpush.bf16.msrb.mxu3 %v3351_v21  ;;  %1678 = vmatpush.bf16.msrb.mxu1 %v3333_v39  ;;  %v3380_v21 = vld [vmem:[#allocation7 + $0x238] sm:$0xff] }
 0x149   : > { %v698_v40 = vmul.f32 %v4045_v43, %v652_v34  ;;  %1820 = vmatpush.bf16.msrb.mxu2 %v3341_v30 }
 0x14a   : > { %v1153_v42 = vunpack.c.l.b16 %v874_v36  ;;  %v919_v44 = vsel %vm913_vm3, %v894_v29, %v906_v32  ;;  %v931_v47 = vsel %vm913_vm3, %v906_v32, %v894_v29  ;;  %v1022_v48 = vsel %vm1016_vm4, %v997_v31, %v1009_v33 }
 0x14b   : > { %v726_v51 = vadd.f32 %v4050_v45, %v698_v40  ;;  %v952_v52 = vsel %vm887_vm5, %v931_v47, 0.0  ;;  %v977_v53 = vpack.c.bf16 %v919_v44, %v919_v44  ;;  %v1034_v55 = vsel %vm1016_vm4, %v1009_v33, %v997_v31  ;;  %v3350_v40 = vld [vmem:[#allocation7 + $0x148] sm:$0xff] }
 0x14c   : > { %v4241_v56 = vpack.c.b16 %v1153_v42, %v1152_v41  ;;  %v976_v57 = vpack.c.bf16 %v952_v52, %v952_v52  ;;  %v1056_v58 = vsel %vm991_vm6, %v1034_v55, 0.0  ;;  %v1079_v59 = vpack.c.bf16 %v1022_v48, %v1022_v48  ;;  %1961 = vmatpush.bf16.msrb.mxu3 %v3350_v40 }
 0x14d   : > { %v1298_v62 = vunpack.c.l.b16 %v977_v53  ;;  %v1080_v0 = vpack.c.bf16 %v1056_v58, %v1056_v58  ;;  %v803_v1 = vmax.f32 %v726_v51, 0.0  ;;  %2381 = vmatpush.bf16.msra.mxu2 %v3380_v21 }
 0x14e   : > { %1255 = vmatmul.bf16.gmra.mxu1 %v4241_v56  ;;  %v1297_v2 = vunpack.c.l.b16 %v976_v57  ;;  %v1459_v3 = vunpack.c.l.b16 %v1079_v59 }
 0x14f   : > { %v1460_v7 = vunpack.c.l.b16 %v1080_v0  ;;  %v851_v12 = vsel %vm4248_vm12, %v803_v1, 0.0 }
 0x150   : > { %v654_v8 = vpop.f32.mrf.mxu0  ;;  %v4252_v9 = vpack.c.b16 %v1298_v62, %v1297_v2  ;;  %v875_v17 = vpack.c.bf16 %v851_v12, %v851_v12  ;;  %v895_v22 = vrot.slane %v851_v12, 6  ;;  %v998_v25 = vrot.slane %v851_v12, 2  ;;  %v3349_v62 = vld [vmem:[#allocation7 + $0x140] sm:$0xff] }
 0x151   : > { %v699_v10 = vmul.f32 %v4045_v43, %v654_v8  ;;  %v4255_v11 = vpack.c.b16 %v1460_v7, %v1459_v3  ;;  %1962 = vmatpush.bf16.msrb.mxu3 %v3349_v62 }
 0x152   : > { %1400 = vmatmul.bf16.gmra.mxu2 %v4252_v9  ;;  %2110 = vmatmul.bf16.gmra.mxu0 %v4252_v9  ;;  %v1154_v32 = vunpack.c.l.b16 %v875_v17 }
 0x153   : > { %v727_v14 = vadd.f32 %v4050_v45, %v699_v10  ;;  %1562 = vmatmul.bf16.gmra.mxu3 %v4255_v11 }
 0x155   : > { %v804_v15 = vmax.f32 %v727_v14, 0.0 }
 0x157   : > { %v852_v23 = vsel %vm4248_vm12, %v804_v15, 0.0 }
 0x158   : > { %v907_v26 = vrot.slane %v852_v23, 6  ;;  %v1010_v27 = vrot.slane %v852_v23, 2  ;;  %v657_v28 = vpop.f32.mrf.mxu0  ;;  %v876_v29 = vpack.c.bf16 %v852_v23, %v852_v23 }
 0x159   : > { %v700_v31 = vmul.f32 %v4045_v43, %v657_v28 }
 0x15a   : > { %v1155_v33 = vunpack.c.l.b16 %v876_v29  ;;  %v920_v34 = vsel %vm913_vm3, %v895_v22, %v907_v26  ;;  %v932_v36 = vsel %vm913_vm3, %v907_v26, %v895_v22  ;;  %v1023_v38 = vsel %vm1016_vm4, %v998_v25, %v1010_v27  ;;  %v3372_v22 = vld [vmem:[#allocation7 + $0x1f8] sm:$0xff] }
 0x15b   : > { %v728_v41 = vadd.f32 %v4050_v45, %v700_v31  ;;  %v954_v42 = vsel %vm887_vm5, %v932_v36, 0.0  ;;  %v979_v44 = vpack.c.bf16 %v920_v34, %v920_v34  ;;  %v1035_v47 = vsel %vm1016_vm4, %v1010_v27, %v998_v25  ;;  %2239 = vmatpush.bf16.msra.mxu0 %v3372_v22  ;;  %3390 = vmatpush.bf16.msra.mxu1 %v3372_v22 }
 0x15c   : > { %v4278_v48 = vpack.c.b16 %v1155_v33, %v1154_v32  ;;  %v978_v50 = vpack.c.bf16 %v954_v42, %v954_v42  ;;  %v1058_v51 = vsel %vm991_vm6, %v1035_v47, 0.0  ;;  %v1081_v52 = vpack.c.bf16 %v1023_v38, %v1023_v38 }
 0x15d   : > { %v1300_v53 = vunpack.c.l.b16 %v979_v44  ;;  %v1082_v55 = vpack.c.bf16 %v1058_v51, %v1058_v51  ;;  %v805_v57 = vmax.f32 %v728_v41, 0.0  ;;  %v751_v25 = vadd.s32 8, %v4054_v49 }
 0x15e   : > { %1260 = vmatmul.bf16.gmra.mxu1 %v4278_v48  ;;  %v1299_v58 = vunpack.c.l.b16 %v978_v50  ;;  %v1461_v59 = vunpack.c.l.b16 %v1081_v52 }
 0x15f   : > { %v1462_v0 = vunpack.c.l.b16 %v1082_v55  ;;  %v853_v5 = vsel %vm786_vm15, %v805_v57, 0.0  ;;  %vm763_vm0 = vcmp.ge.s32.totalorder %v751_v25, 0  ;;  %vm775_vm1 = vcmp.lt.s32.totalorder %v751_v25, 16 }
 0x160   : > { %v659_v1 = vpop.f32.mrf.mxu0  ;;  %v4285_v2 = vpack.c.b16 %v1300_v53, %v1299_v58  ;;  %v877_v10 = vpack.c.bf16 %v853_v5, %v853_v5  ;;  %v896_v12 = vrot.slane %v853_v5, 6  ;;  %v999_v14 = vrot.slane %v853_v5, 2  ;;  %vm787_vm2 = vmand %vm763_vm0, %vm775_vm1 }
 0x161   : > { %v701_v3 = vmul.f32 %v4045_v43, %v659_v1  ;;  %v4288_v4 = vpack.c.b16 %v1462_v0, %v1461_v59 }
 0x162   : > { %1405 = vmatmul.bf16.gmra.mxu2 %v4285_v2  ;;  %2115 = vmatmul.bf16.gmra.mxu0 %v4285_v2  ;;  %v1156_v26 = vunpack.c.l.b16 %v877_v10 }
 0x163   : > { %v729_v7 = vadd.f32 %v4050_v45, %v701_v3  ;;  %1567 = vmatmul.bf16.gmra.mxu3 %v4288_v4 }
 0x165   : > { %v806_v8 = vmax.f32 %v729_v7, 0.0  ;;  %v3379_v7 = vld [vmem:[#allocation7 + $0x230] sm:$0xff] }
 0x166   : > { %2382 = vmatpush.bf16.msra.mxu2 %v3379_v7 }
 0x167   : > { %v854_v13 = vsel %vm786_vm15, %v806_v8, 0.0  ;;  %v3371_v8 = vld [vmem:[#allocation7 + $0x1f0] sm:$0xff] }
 0x168   : > { %v908_v15 = vrot.slane %v854_v13, 6  ;;  %v1011_v16 = vrot.slane %v854_v13, 2  ;;  %v662_v17 = vpop.f32.mrf.mxu0  ;;  %v878_v19 = vpack.c.bf16 %v854_v13, %v854_v13  ;;  %2240 = vmatpush.bf16.msra.mxu0 %v3371_v8  ;;  %3391 = vmatpush.bf16.msra.mxu1 %v3371_v8 }
 0x169   : > { %v702_v23 = vmul.f32 %v4045_v43, %v662_v17 }
 0x16a   : > { %v1157_v27 = vunpack.c.l.b16 %v878_v19  ;;  %v921_v28 = vsel %vm913_vm3, %v896_v12, %v908_v15  ;;  %v933_v29 = vsel %vm913_vm3, %v908_v15, %v896_v12  ;;  %v1024_v30 = vsel %vm1016_vm4, %v999_v14, %v1011_v16 }
 0x16b   : > { %v730_v31 = vadd.f32 %v4050_v45, %v702_v23  ;;  %v956_v32 = vsel %vm887_vm5, %v933_v29, 0.0  ;;  %v981_v33 = vpack.c.bf16 %v921_v28, %v921_v28  ;;  %v1036_v34 = vsel %vm1016_vm4, %v1011_v16, %v999_v14 }
 0x16c   : > { %v4307_v36 = vpack.c.b16 %v1157_v27, %v1156_v26  ;;  %v980_v38 = vpack.c.bf16 %v956_v32, %v956_v32  ;;  %v1060_v39 = vsel %vm991_vm6, %v1036_v34, 0.0  ;;  %v1083_v40 = vpack.c.bf16 %v1024_v30, %v1024_v30 }
 0x16d   : > { %v1302_v41 = vunpack.c.l.b16 %v981_v33  ;;  %v1084_v42 = vpack.c.bf16 %v1060_v39, %v1060_v39  ;;  %v807_v50 = vmax.f32 %v730_v31, 0.0  ;;  %v752_v12 = vadd.s32 9, %v4054_v49 }
 0x16e   : > { %1265 = vmatmul.bf16.gmra.mxu1 %v4307_v36  ;;  %v1301_v44 = vunpack.c.l.b16 %v980_v38  ;;  %v1463_v47 = vunpack.c.l.b16 %v1083_v40 }
 0x16f   : > { %v1464_v51 = vunpack.c.l.b16 %v1084_v42  ;;  %v4319_v58 = vsel %vm787_vm2, %v807_v50, 0.0  ;;  %vm764_vm7 = vcmp.ge.s32.totalorder %v752_v12, 0  ;;  %vm776_vm8 = vcmp.lt.s32.totalorder %v752_v12, 16  ;;  %v3378_v42 = vld [vmem:[#allocation7 + $0x228] sm:$0xff]  ;;  %v3369_v12 = vld [vmem:[#allocation7 + $0x1e0] sm:$0xff] }
 0x170   : > { %v664_v52 = vpop.f32.mrf.mxu0  ;;  %v4312_v53 = vpack.c.b16 %v1302_v41, %v1301_v44  ;;  %v897_v0 = vrot.slane %v4319_v58, 6  ;;  %vm788_vm9 = vmand %vm764_vm7, %vm776_vm8  ;;  %v3370_v44 = vld [vmem:[#allocation7 + $0x1e8] sm:$0xff]  ;;  %2383 = vmatpush.bf16.msra.mxu2 %v3378_v42 }
 0x171   : > { %v703_v55 = vmul.f32 %v4045_v43, %v664_v52  ;;  %v4315_v57 = vpack.c.b16 %v1464_v51, %v1463_v47  ;;  %2241 = vmatpush.bf16.msra.mxu0 %v3370_v44  ;;  %3392 = vmatpush.bf16.msra.mxu1 %v3370_v44  ;;  %v754_v44 = vadd.s32 11, %v4054_v49 }
 0x172   : > { %1410 = vmatmul.bf16.gmra.mxu2 %v4312_v53  ;;  %2120 = vmatmul.bf16.gmra.mxu0 %v4312_v53 }
 0x173   : > { %v731_v59 = vadd.f32 %v4050_v45, %v703_v55  ;;  %1572 = vmatmul.bf16.gmra.mxu3 %v4315_v57  ;;  %vm766_vm13 = vcmp.ge.s32.totalorder %v754_v44, 0  ;;  %vm778_vm14 = vcmp.lt.s32.totalorder %v754_v44, 16 }
 0x174   : > { %vm4417_vm15 = vmand %vm766_vm13, %vm778_vm14 }
 0x175   : > { %v808_v62 = vmax.f32 %v731_v59, 0.0  ;;  %2242 = vmatpush.bf16.msra.mxu0 %v3369_v12  ;;  %3393 = vmatpush.bf16.msra.mxu1 %v3369_v12 }
 0x177   : > { %v4324_v1 = vsel %vm787_vm2, %v808_v62, 0.0 }
 0x178   : > { %v909_v3 = vrot.slane %v4324_v1, 6  ;;  %v667_v5 = vpop.f32.mrf.mxu0 }
 0x179   : > { %v704_v10 = vmul.f32 %v4045_v43, %v667_v5 }
 0x17a   : > { %v922_v13 = vsel %vm913_vm3, %v897_v0, %v909_v3  ;;  %v934_v14 = vsel %vm913_vm3, %v909_v3, %v897_v0 }
 0x17b   : > { %v732_v15 = vadd.f32 %v4050_v45, %v704_v10  ;;  %v1231_v16 = vpop.f32.mrf.mxu1  ;;  %v958_v17 = vsel %vm887_vm5, %v934_v14, 0.0  ;;  %v983_v19 = vpack.c.bf16 %v922_v13, %v922_v13 }
 0x17c   : > { %v982_v21 = vpack.c.bf16 %v958_v17, %v958_v17 }
 0x17d   : > { %v1616_v22 = vunpack.c.l.b16 %v983_v19  ;;  %v809_v25 = vmax.f32 %v732_v15, 0.0 }
 0x17e   : > { %1679 = vmatmul.bf16.vlgmr.msrb.gmra.mxu1 %v4155_v61  ;;  %v1615_v23 = vunpack.c.l.b16 %v982_v21  ;;  %v1000_v21 = vrot.slane %v4319_v58, 2 }
 0x17f   : > { %v4342_v29 = vsel %vm788_vm9, %v809_v25, 0.0 }
 0x180   : > { %v669_v26 = vpop.f32.mrf.mxu0  ;;  %v4337_v27 = vpack.c.b16 %v1616_v22, %v1615_v23  ;;  %v898_v33 = vrot.slane %v4342_v29, 6  ;;  %v3368_v22 = vld [vmem:[#allocation7 + $0x1d8] sm:$0xff] }
 0x181   : > { %v705_v28 = vmul.f32 %v4045_v43, %v669_v26  ;;  %2243 = vmatpush.bf16.msra.mxu0 %v3368_v22  ;;  %3394 = vmatpush.bf16.msra.mxu1 %v3368_v22  ;;  %v3365_v22 = vld [vmem:[#allocation7 + $0x1c0] sm:$0xff] }
 0x182   : > { %1821 = vmatmul.bf16.vlgmr.msrb.gmra.mxu2 %v4148_v46  ;;  %2125 = vmatmul.bf16.gmra.mxu0 %v4337_v27 }
 0x183   : > { %v733_v30 = vadd.f32 %v4050_v45, %v705_v28  ;;  %1963 = vmatmul.bf16.vlgmr.msrb.gmra.mxu3 %v4158_v63  ;;  %v1233_v31 = vpop.f32.mrf.mxu1  ;;  %v753_v63 = vadd.s32 10, %v4054_v49  ;;  %v3377_v28 = vld [vmem:[#allocation7 + $0x220] sm:$0xff] }
 0x184   : > { %2384 = vmatpush.bf16.msra.mxu2 %v3377_v28 }
 0x185   : > { %v810_v61 = vmax.f32 %v733_v30, 0.0  ;;  %v1376_v32 = vpop.f32.mrf.mxu2  ;;  %vm765_vm10 = vcmp.ge.s32.totalorder %v753_v63, 0  ;;  %vm777_vm11 = vcmp.lt.s32.totalorder %v753_v63, 16  ;;  %v3544_v63 = vld [vmem:[%s4861_s4] ss:$0 sm:$0xff] }
 0x186   : > { %v1377_v34 = vadd.f32 %v1376_v32, %v1231_v16  ;;  %v1538_v38 = vpop.f32.mrf.mxu3  ;;  %vm4362_vm12 = vmand %vm765_vm10, %vm777_vm11 }
 0x187   : > { %v4347_v39 = vsel %vm788_vm9, %v810_v61, 0.0 }
 0x188   : > { %v910_v40 = vrot.slane %v4347_v39, 6  ;;  %v4350_v46 = vadd.f32 %v1538_v38, %v1377_v34  ;;  %v672_v41 = vpop.f32.mrf.mxu0 }
 0x189   : > { %v706_v47 = vmul.f32 %v4045_v43, %v672_v41 }
 0x18a   : > { %v923_v50 = vsel %vm913_vm3, %v898_v33, %v910_v40  ;;  %v935_v51 = vsel %vm913_vm3, %v910_v40, %v898_v33 }
 0x18b   : > { %v734_v52 = vadd.f32 %v4050_v45, %v706_v47  ;;  %v1236_v55 = vpop.f32.mrf.mxu1  ;;  %v960_v59 = vsel %vm887_vm5, %v935_v51, 0.0  ;;  %v985_v62 = vpack.c.bf16 %v923_v50, %v923_v50 }
 0x18c   : > { %v984_v0 = vpack.c.bf16 %v960_v59, %v960_v59 }
 0x18d   : > { %v1378_v3 = vpop.f32.mrf.mxu2  ;;  %v1618_v5 = vunpack.c.l.b16 %v985_v62  ;;  %v811_v13 = vmax.f32 %v734_v52, 0.0  ;;  %v3366_v62 = vld [vmem:[#allocation7 + $0x1c8] sm:$0xff] }
 0x18e   : > { %v1379_v7 = vadd.f32 %v1378_v3, %v1233_v31  ;;  %v1540_v8 = vpop.f32.mrf.mxu3  ;;  %1684 = vmatmul.bf16.gmra.mxu1 %v4183_v35  ;;  %v1617_v10 = vunpack.c.l.b16 %v984_v0  ;;  %v1012_v35 = vrot.slane %v4324_v1, 2  ;;  %v880_v31 = vpack.c.bf16 %v4324_v1, %v4324_v1  ;;  %v3545_v0 = vld [vmem:[%s4911_s26] ss:$0 sm:$0xff] }
 0x18f   : > { %v4377_v23 = vsel %vm4362_vm12, %v811_v13, 0.0 }
 0x190   : > { %v4366_v15 = vadd.f32 %v1540_v8, %v1379_v7  ;;  %v674_v16 = vpop.f32.mrf.mxu0  ;;  %v4368_v17 = vpack.c.b16 %v1618_v5, %v1617_v10  ;;  %v899_v61 = vrot.slane %v4377_v23, 6  ;;  %v1758_v40 = vunpack.c.l.b16 %v880_v31 }
 0x191   : > { %v707_v19 = vmul.f32 %v4045_v43, %v674_v16 }
 0x192   : > { %1826 = vmatmul.bf16.gmra.mxu2 %v4176_v24  ;;  %2130 = vmatmul.bf16.gmra.mxu0 %v4368_v17  ;;  %v879_v24 = vpack.c.bf16 %v4319_v58, %v4319_v58  ;;  %v1025_v58 = vsel %vm1016_vm4, %v1000_v21, %v1012_v35 }
 0x193   : > { %v735_v25 = vadd.f32 %v4050_v45, %v707_v19  ;;  %1968 = vmatmul.bf16.gmra.mxu3 %v4186_v37  ;;  %v1238_v26 = vpop.f32.mrf.mxu1  ;;  %v3367_v45 = vld [vmem:[#allocation7 + $0x1d0] sm:$0xff]  ;;  %v1037_v37 = vsel %vm1016_vm4, %v1012_v35, %v1000_v21  ;;  %v1085_v52 = vpack.c.bf16 %v1025_v58, %v1025_v58  ;;  %v881_v58 = vpack.c.bf16 %v4342_v29, %v4342_v29 }
 0x194   : > { %v1757_v38 = vunpack.c.l.b16 %v879_v24  ;;  %2244 = vmatpush.bf16.msra.mxu0 %v3367_v45  ;;  %v1062_v47 = vsel %vm991_vm6, %v1037_v37, 0.0  ;;  %3395 = vmatpush.bf16.msra.mxu1 %v3367_v45  ;;  %v3376_v37 = vld [vmem:[#allocation7 + $0x218] sm:$0xff] }
 0x195   : > { %v812_v43 = vmax.f32 %v735_v25, 0.0  ;;  %v1381_v30 = vpop.f32.mrf.mxu2  ;;  %v1899_v10 = vunpack.c.l.b16 %v1085_v52  ;;  %2385 = vmatpush.bf16.msra.mxu2 %v3376_v37  ;;  %v1759_v52 = vunpack.c.l.b16 %v881_v58 }
 0x196   : > { %v1382_v32 = vadd.f32 %v1381_v30, %v1236_v55  ;;  %v1543_v33 = vpop.f32.mrf.mxu3  ;;  %v4403_v51 = vpack.c.b16 %v1758_v40, %v1757_v38  ;;  %v1086_v55 = vpack.c.bf16 %v1062_v47, %v1062_v47 }
 0x197   : > { %v4390_v34 = vsel %vm4362_vm12, %v812_v43, 0.0 }
 0x198   : > { %v911_v41 = vrot.slane %v4390_v34, 6  ;;  %v4395_v1 = vadd.f32 %v1543_v33, %v1382_v32  ;;  %v677_v42 = vpop.f32.mrf.mxu0  ;;  %2245 = vmatpush.bf16.msra.mxu0 %v3366_v62  ;;  %v1900_v13 = vunpack.c.l.b16 %v1086_v55  ;;  %3396 = vmatpush.bf16.msra.mxu1 %v3366_v62 }
 0x199   : > { %v708_v50 = vmul.f32 %v3544_v63, %v677_v42 }
 0x19a   : > { %v924_v59 = vsel %vm913_vm3, %v899_v61, %v911_v41  ;;  %v936_v49 = vsel %vm913_vm3, %v911_v41, %v899_v61  ;;  %v4415_v25 = vpack.c.b16 %v1900_v13, %v1899_v10  ;;  %v882_v41 = vpack.c.bf16 %v4347_v39, %v4347_v39 }
 0x19b   : > { %v736_v3 = vadd.f32 %v3545_v0, %v708_v50  ;;  %v1241_v5 = vpop.f32.mrf.mxu1  ;;  %v962_v7 = vsel %vm887_vm5, %v936_v49, 0.0  ;;  %v987_v8 = vpack.c.bf16 %v924_v59, %v924_v59 }
 0x19c   : > { %v986_v12 = vpack.c.bf16 %v962_v7, %v962_v7  ;;  %2246 = vmatpush.bf16.msra.mxu0 %v3365_v22  ;;  %3397 = vmatpush.bf16.msra.mxu1 %v3365_v22  ;;  %v1760_v55 = vunpack.c.l.b16 %v882_v41 }
 0x19d   : > { %v1383_v14 = vpop.f32.mrf.mxu2  ;;  %v2042_v16 = vunpack.c.l.b16 %v987_v8  ;;  %v813_v28 = vmax.f32 %v736_v3, 0.0 }
 0x19e   : > { %v1384_v19 = vadd.f32 %v1383_v14, %v1238_v26  ;;  %v1545_v21 = vpop.f32.mrf.mxu3  ;;  %1689 = vmatmul.bf16.gmra.mxu1 %v4215_v18  ;;  %v2041_v35 = vunpack.c.l.b16 %v986_v12  ;;  %v1001_v26 = vrot.slane %v4342_v29, 2  ;;  %v1013_v18 = vrot.slane %v4347_v39, 2 }
 0x19f   : > { %v4428_v32 = vsel %vm4417_vm15, %v813_v28, 0.0  ;;  %v4449_v62 = vpack.c.b16 %v1760_v55, %v1759_v52 }
 0x1a0   : > { %v4421_v30 = vadd.f32 %v1545_v21, %v1384_v19  ;;  %v679_v24 = vpop.f32.mrf.mxu0  ;;  %v2045_v31 = vpack.c.b16 %v2042_v16, %v2041_v35  ;;  %v900_v42 = vrot.slane %v4428_v32, 6  ;;  %v1026_v59 = vsel %vm1016_vm4, %v1001_v26, %v1013_v18 }
 0x1a1   : > { %v709_v61 = vmul.f32 %v3544_v63, %v679_v24  ;;  %v1038_v63 = vsel %vm1016_vm4, %v1013_v18, %v1001_v26  ;;  %v1014_v26 = vrot.slane %v4390_v34, 2 }
 0x1a2   : > { %1831 = vmatmul.bf16.gmra.mxu2 %v4204_v6  ;;  %2135 = vmatmul.bf16.gmra.mxu0 %v2045_v31  ;;  %v1064_v39 = vsel %vm991_vm6, %v1038_v63, 0.0 }
 0x1a3   : > { %v737_v33 = vadd.f32 %v3545_v0, %v709_v61  ;;  %1973 = vmatmul.bf16.gmra.mxu3 %v4218_v20  ;;  %v1243_v45 = vpop.f32.mrf.mxu1  ;;  %v1087_v0 = vpack.c.bf16 %v1026_v59, %v1026_v59  ;;  %v1088_v3 = vpack.c.bf16 %v1064_v39, %v1064_v39  ;;  %v1002_v61 = vrot.slane %v4377_v23, 2 }
 0x1a5   : > { %v814_v38 = vmax.f32 %v737_v33, 0.0  ;;  %v1386_v40 = vpop.f32.mrf.mxu2  ;;  %v1901_v13 = vunpack.c.l.b16 %v1087_v0  ;;  %v1902_v14 = vunpack.c.l.b16 %v1088_v3  ;;  %v3375_v33 = vld [vmem:[#allocation7 + $0x210] sm:$0xff]  ;;  %v1039_v58 = vsel %vm1016_vm4, %v1014_v26, %v1002_v61 }
 0x1a6   : > { %v1387_v44 = vadd.f32 %v1386_v40, %v1241_v5  ;;  %v1548_v47 = vpop.f32.mrf.mxu3  ;;  %2386 = vmatpush.bf16.msra.mxu2 %v3375_v33 }
 0x1a7   : > { %v4440_v50 = vsel %vm4417_vm15, %v814_v38, 0.0  ;;  %v4457_v35 = vpack.c.b16 %v1902_v14, %v1901_v13  ;;  %v3374_v13 = vld [vmem:[#allocation7 + $0x208] sm:$0xff] }
 0x1a8   : > { %v912_v29 = vrot.slane %v4440_v50, 6  ;;  %v4445_v49 = vadd.f32 %v1548_v47, %v1387_v44  ;;  %v1027_v44 = vsel %vm1016_vm4, %v1002_v61, %v1014_v26  ;;  %v1066_v47 = vsel %vm991_vm6, %v1039_v58, 0.0 }
 0x1a9   : > { %v1090_v52 = vpack.c.bf16 %v1066_v47, %v1066_v47 }
 0x1aa   : > { %v925_v5 = vsel %vm913_vm3, %v900_v42, %v912_v29  ;;  %v937_v7 = vsel %vm913_vm3, %v912_v29, %v900_v42  ;;  %2387 = vmatpush.bf16.msra.mxu2 %v3374_v13 }
 0x1ab   : > { %v1246_v8 = vpop.f32.mrf.mxu1  ;;  %v964_v10 = vsel %vm887_vm5, %v937_v7, 0.0  ;;  %v989_v12 = vpack.c.bf16 %v925_v5, %v925_v5  ;;  %v4486_v59 = vunpack.c.l.b16 %v1090_v52 }
 0x1ac   : > { %v988_v16 = vpack.c.bf16 %v964_v10, %v964_v10  ;;  %v1015_v10 = vrot.slane %v4440_v50, 2 }
 0x1ad   : > { %v1388_v19 = vpop.f32.mrf.mxu2  ;;  %v2044_v21 = vunpack.c.l.b16 %v989_v12 }
 0x1ae   : > { %v1389_v22 = vadd.f32 %v1388_v19, %v1243_v45  ;;  %v1550_v28 = vpop.f32.mrf.mxu3  ;;  %1694 = vmatmul.bf16.gmra.mxu1 %v4252_v9  ;;  %v2043_v43 = vunpack.c.l.b16 %v988_v16  ;;  %v883_v9 = vpack.c.bf16 %v4377_v23, %v4377_v23  ;;  %v884_v45 = vpack.c.bf16 %v4390_v34, %v4390_v34 }
 0x1af   : > { %v1089_v23 = vpack.c.bf16 %v1027_v44, %v1027_v44  ;;  %v885_v16 = vpack.c.bf16 %v4428_v32, %v4428_v32 }
 0x1b0   : > { %v4460_v24 = vadd.f32 %v1550_v28, %v1389_v22  ;;  %v2046_v31 = vpack.c.b16 %v2044_v21, %v2043_v43  ;;  %v4472_v41 = vunpack.c.l.b16 %v883_v9  ;;  %v4474_v42 = vunpack.c.l.b16 %v884_v45 }
 0x1b1   : > { %v4484_v55 = vunpack.c.l.b16 %v1089_v23  ;;  %v4504_v28 = vunpack.c.l.b16 %v885_v16 }
 0x1b2   : > { %1836 = vmatmul.bf16.gmra.mxu2 %v4241_v56  ;;  %2140 = vmatmul.bf16.gmra.mxu0 %v2046_v31  ;;  %v2187_v34 = vpack.c.b16 %v4474_v42, %v4472_v41 }
 0x1b3   : > { %1978 = vmatmul.bf16.gmra.mxu3 %v4255_v11  ;;  %v1248_v18 = vpop.f32.mrf.mxu1  ;;  %v2329_v39 = vpack.c.b16 %v4486_v59, %v4484_v55 }
 0x1b5   : > { %v1391_v37 = vpop.f32.mrf.mxu2 }
 0x1b6   : > { %v1392_v38 = vadd.f32 %v1391_v37, %v1246_v8  ;;  %v1553_v40 = vpop.f32.mrf.mxu3  ;;  %v1003_v8 = vrot.slane %v4428_v32, 2 }
 0x1b8   : > { %v4480_v63 = vadd.f32 %v1553_v40, %v1392_v38  ;;  %v1040_v22 = vsel %vm1016_vm4, %v1015_v10, %v1003_v8  ;;  %v1028_v43 = vsel %vm1016_vm4, %v1003_v8, %v1015_v10  ;;  %v3373_v40 = vld [vmem:[#allocation7 + $0x200] sm:$0xff] }
 0x1b9   : > { %v1068_v31 = vsel %vm991_vm6, %v1040_v22, 0.0  ;;  %v1091_v32 = vpack.c.bf16 %v1028_v43, %v1028_v43  ;;  %2388 = vmatpush.bf16.msra.mxu2 %v3373_v40 }
 0x1ba   : > { %v1092_v26 = vpack.c.bf16 %v1068_v31, %v1068_v31 }
 0x1bb   : > { %v1251_v29 = vpop.f32.mrf.mxu1 }
 0x1bc   : > { %v4518_v33 = vunpack.c.l.b16 %v1092_v26 }
 0x1bd   : > { %v1393_v0 = vpop.f32.mrf.mxu2 }
 0x1be   : > { %v1394_v3 = vadd.f32 %v1393_v0, %v1248_v18  ;;  %v1555_v5 = vpop.f32.mrf.mxu3  ;;  %1699 = vmatmul.bf16.gmra.mxu1 %v4285_v2  ;;  %v886_v2 = vpack.c.bf16 %v4440_v50, %v4440_v50  ;;  %v4516_v18 = vunpack.c.l.b16 %v1091_v32 }
 0x1c0   : > { %v4491_v7 = vadd.f32 %v1555_v5, %v1394_v3  ;;  %v2330_v9 = vpack.c.b16 %v4518_v33, %v4516_v18 }
 0x1c2   : > { %1841 = vmatmul.bf16.gmra.mxu2 %v4278_v48  ;;  %2247 = vmatmul.bf16.vlgmr.msra.gmra.mxu0 %v4204_v6  ;;  %v4506_v6 = vunpack.c.l.b16 %v886_v2 }
 0x1c3   : > { %1983 = vmatmul.bf16.gmra.mxu3 %v4288_v4  ;;  %v1253_v12 = vpop.f32.mrf.mxu1 }
 0x1c4   : > { %v2188_v50 = vpack.c.b16 %v4506_v6, %v4504_v28 }
 0x1c5   : > { %v1396_v14 = vpop.f32.mrf.mxu2 }
 0x1c6   : > { %v1397_v19 = vadd.f32 %v1396_v14, %v1251_v29  ;;  %v1558_v21 = vpop.f32.mrf.mxu3 }
 0x1c8   : > { %v4512_v61 = vadd.f32 %v1558_v21, %v1397_v19 }
 0x1cb   : > { %v1256_v37 = vpop.f32.mrf.mxu1 }
 0x1cd   : > { %v1398_v54 = vpop.f32.mrf.mxu2 }
 0x1ce   : > { %v4522_v45 = vadd.f32 %v1398_v54, %v1253_v12  ;;  %v4524_v60 = vpop.f32.mrf.mxu3  ;;  %1704 = vmatmul.bf16.gmra.mxu1 %v4312_v53  ;;  %v4536_v53 = vpop.f32.mrf.mxu0 }
 0x1d2   : > { %1846 = vmatmul.bf16.gmra.mxu2 %v4307_v36 }
 0x1d3   : > { %1988 = vmatmul.bf16.gmra.mxu3 %v4315_v57  ;;  %v1258_v38 = vpop.f32.mrf.mxu1 }
 0x1d5   : > { %v1401_v58 = vpop.f32.mrf.mxu2 }
 0x1d6   : > { %v1402_v44 = vadd.f32 %v1401_v58, %v1256_v37  ;;  %v1563_v47 = vpop.f32.mrf.mxu3  ;;  %v4542_v14 = vpop.f32.mrf.mxu0  ;;  %v3388_v37 = vld [vmem:[#allocation8 + $0x38] sm:$0xff] }
 0x1d7   : > { %2574 = vmatpush.bf16.msra.mxu3 %v3388_v37 }
 0x1d8   : > { %v4529_v23 = vadd.f32 %v1563_v47, %v1402_v44 }
 0x1db   : > { %v1261_v52 = vpop.f32.mrf.mxu1 }
 0x1dd   : > { %v1403_v29 = vpop.f32.mrf.mxu2 }
 0x1de   : > { %v4531_v0 = vadd.f32 %v1403_v29, %v1258_v38  ;;  %v4533_v3 = vpop.f32.mrf.mxu3  ;;  %1709 = vmatmul.bf16.gmra.mxu1 %v4337_v27  ;;  %v4550_v27 = vpop.f32.mrf.mxu0 }
 0x1e2   : > { %1851 = vmatmul.bf16.gmra.mxu2 %v4403_v51 }
 0x1e3   : > { %1993 = vmatmul.bf16.gmra.mxu3 %v4415_v25  ;;  %v1263_v5 = vpop.f32.mrf.mxu1 }
 0x1e5   : > { %v1406_v8 = vpop.f32.mrf.mxu2 }
 0x1e6   : > { %v1407_v10 = vadd.f32 %v1406_v8, %v1261_v52  ;;  %v1568_v12 = vpop.f32.mrf.mxu3  ;;  %v4556_v40 = vpop.f32.mrf.mxu0  ;;  %v3387_v8 = vld [vmem:[#allocation8 + $0x30] sm:$0xff] }
 0x1e7   : > { %2575 = vmatpush.bf16.msra.mxu3 %v3387_v8 }
 0x1e8   : > { %v4540_v13 = vadd.f32 %v1568_v12, %v1407_v10 }
 0x1eb   : > { %v1266_v16 = vpop.f32.mrf.mxu1 }
 0x1ed   : > { %v1408_v2 = vpop.f32.mrf.mxu2 }
 0x1ee   : > { %v4544_v19 = vadd.f32 %v1408_v2, %v1263_v5  ;;  %v4546_v21 = vpop.f32.mrf.mxu3  ;;  %1714 = vmatmul.bf16.gmra.mxu1 %v4368_v17  ;;  %v4565_v5 = vpop.f32.mrf.mxu0 }
 0x1f2   : > { %1856 = vmatmul.bf16.gmra.mxu2 %v4449_v62 }
 0x1f3   : > { %1998 = vmatmul.bf16.gmra.mxu3 %v4457_v35  ;;  %v1268_v22 = vpop.f32.mrf.mxu1 }
 0x1f5   : > { %v1411_v43 = vpop.f32.mrf.mxu2 }
 0x1f6   : > { %v1412_v31 = vadd.f32 %v1411_v43, %v1266_v16  ;;  %v1573_v32 = vpop.f32.mrf.mxu3  ;;  %v3386_v43 = vld [vmem:[#allocation8 + $0x28] sm:$0xff] }
 0x1f7   : > { %2576 = vmatpush.bf16.msra.mxu3 %v3386_v43 }
 0x1f8   : > { %v4553_v26 = vadd.f32 %v1573_v32, %v1412_v31 }
 0x1fb   : > { %v1680_v54 = vpop.f32.mrf.mxu1 }
 0x1fc   : > { %v1720_v38 = vadd.f32 %v1680_v54, %v4350_v46 }
 0x1fd   : > { %v1413_v17 = vpop.f32.mrf.mxu2 }
 0x1fe   : > { %v4558_v58 = vadd.f32 %v1413_v17, %v1268_v22  ;;  %2252 = vmatmul.bf16.vlgmr.msra.gmra.mxu1 %v4241_v56  ;;  %v4571_v56 = vpop.f32.mrf.mxu0 }
 0x202   : > { %2389 = vmatmul.bf16.vlgmr.msra.gmra.mxu2 %v4218_v20 }
 0x203   : > { %v1682_v44 = vpop.f32.mrf.mxu1 }
 0x204   : > { %v1721_v47 = vadd.f32 %v1682_v44, %v4366_v15  ;;  %v3385_v44 = vld [vmem:[#allocation8 + $0x20] sm:$0xff] }
 0x205   : > { %v1822_v52 = vpop.f32.mrf.mxu2  ;;  %2577 = vmatpush.bf16.msra.mxu3 %v3385_v44 }
 0x206   : > { %v4563_v29 = vadd.f32 %v1822_v52, %v1720_v38  ;;  %v4577_v31 = vpop.f32.mrf.mxu0 }
 0x20b   : > { %v1685_v46 = vpop.f32.mrf.mxu1 }
 0x20c   : > { %v1722_v10 = vadd.f32 %v1685_v46, %v4395_v1 }
 0x20d   : > { %v1824_v12 = vpop.f32.mrf.mxu2 }
 0x20e   : > { %v4568_v16 = vadd.f32 %v1824_v12, %v1721_v47  ;;  %2257 = vmatmul.bf16.gmra.mxu1 %v4278_v48  ;;  %v3384_v12 = vld [vmem:[#allocation8 + $0x18] sm:$0xff] }
 0x20f   : > { %2578 = vmatpush.bf16.msra.mxu3 %v3384_v12 }
 0x212   : > { %2394 = vmatmul.bf16.gmra.mxu2 %v4255_v11 }
 0x213   : > { %v1687_v20 = vpop.f32.mrf.mxu1 }
 0x214   : > { %v1723_v15 = vadd.f32 %v1687_v20, %v4421_v30  ;;  %v4585_v30 = vpop.f32.mrf.mxu0 }
 0x215   : > { %v1827_v2 = vpop.f32.mrf.mxu2 }
 0x216   : > { %v4575_v22 = vadd.f32 %v1827_v2, %v1722_v10 }
 0x21b   : > { %v1690_v1 = vpop.f32.mrf.mxu1 }
 0x21c   : > { %v1724_v32 = vadd.f32 %v1690_v1, %v4445_v49 }
 0x21d   : > { %v1829_v37 = vpop.f32.mrf.mxu2 }
 0x21e   : > { %v4580_v54 = vadd.f32 %v1829_v37, %v1723_v15  ;;  %2262 = vmatmul.bf16.gmra.mxu1 %v4307_v36  ;;  %v4593_v36 = vpop.f32.mrf.mxu0 }
 0x222   : > { %2399 = vmatmul.bf16.gmra.mxu2 %v4288_v4 }
 0x223   : > { %v1692_v11 = vpop.f32.mrf.mxu1 }
 0x224   : > { %v1725_v48 = vadd.f32 %v1692_v11, %v4460_v24  ;;  %v3383_v11 = vld [vmem:[#allocation8 + $0x10] sm:$0xff] }
 0x225   : > { %v1832_v38 = vpop.f32.mrf.mxu2  ;;  %2579 = vmatpush.bf16.msra.mxu3 %v3383_v11 }
 0x226   : > { %v4587_v17 = vadd.f32 %v1832_v38, %v1724_v32  ;;  %v4599_v20 = vpop.f32.mrf.mxu0 }
 0x22b   : > { %v1695_v47 = vpop.f32.mrf.mxu1 }
 0x22c   : > { %v1726_v49 = vadd.f32 %v1695_v47, %v4480_v63  ;;  %v1575_v47 = vpop.f32.mrf.mxu3 }
 0x22d   : > { %v1834_v52 = vpop.f32.mrf.mxu2 }
 0x22e   : > { %v4590_v8 = vadd.f32 %v1834_v52, %v1725_v48  ;;  %2267 = vmatmul.bf16.gmra.mxu1 %v4403_v51  ;;  %v4608_v51 = vpop.f32.mrf.mxu0 }
 0x232   : > { %2404 = vmatmul.bf16.gmra.mxu2 %v4315_v57  ;;  %v1587_v57 = vadd.f32 %v4524_v60, %v4522_v45 }
 0x233   : > { %v1697_v4 = vpop.f32.mrf.mxu1 }
 0x234   : > { %v1727_v24 = vadd.f32 %v1697_v4, %v4491_v7  ;;  %v3382_v4 = vld [vmem:[#allocation8 + $0x8] sm:$0xff] }
 0x235   : > { %v1837_v46 = vpop.f32.mrf.mxu2  ;;  %2580 = vmatpush.bf16.msra.mxu3 %v3382_v4 }
 0x236   : > { %v4597_v10 = vadd.f32 %v1837_v46, %v1726_v49  ;;  %v4613_v38 = vpop.f32.mrf.mxu0 }
 0x23b   : > { %v1700_v63 = vpop.f32.mrf.mxu1 }
 0x23c   : > { %v1728_v15 = vadd.f32 %v1700_v63, %v4512_v61 }
 0x23d   : > { %v1839_v2 = vpop.f32.mrf.mxu2 }
 0x23e   : > { %v4602_v43 = vadd.f32 %v1839_v2, %v1727_v24  ;;  %2272 = vmatmul.bf16.gmra.mxu1 %v4449_v62 }
 0x242   : > { %2409 = vmatmul.bf16.gmra.mxu2 %v4415_v25  ;;  %v1589_v25 = vadd.f32 %v4533_v3, %v4531_v0  ;;  %v1591_v0 = vadd.f32 %v4546_v21, %v4544_v19  ;;  %v1593_v19 = vadd.f32 %v1575_v47, %v4558_v58 }
 0x243   : > { %v1702_v7 = vpop.f32.mrf.mxu1 }
 0x244   : > { %v1729_v1 = vadd.f32 %v1702_v7, %v1587_v57 }
 0x245   : > { %v1842_v32 = vpop.f32.mrf.mxu2 }
 0x246   : > { %v4610_v37 = vadd.f32 %v1842_v32, %v1728_v15 }
 0x24b   : > { %v1705_v61 = vpop.f32.mrf.mxu1 }
 0x24c   : > { %v1730_v48 = vadd.f32 %v1705_v61, %v4529_v23  ;;  %v4625_v23 = vpop.f32.mrf.mxu0 }
 0x24d   : > { %v1844_v62 = vpop.f32.mrf.mxu2 }
 0x24e   : > { %v4615_v44 = vadd.f32 %v1844_v62, %v1729_v1  ;;  %2277 = vmatmul.bf16.gmra.mxu1 %v2187_v34 }
 0x252   : > { %2414 = vmatmul.bf16.gmra.mxu2 %v4457_v35  ;;  %v1964_v35 = vpop.f32.mrf.mxu3 }
 0x253   : > { %v1707_v45 = vpop.f32.mrf.mxu1  ;;  %v2004_v58 = vadd.f32 %v1964_v35, %v4563_v29 }
 0x254   : > { %v1731_v60 = vadd.f32 %v1707_v45, %v1589_v25  ;;  %v4633_v34 = vpop.f32.mrf.mxu0 }
 0x255   : > { %v1847_v49 = vpop.f32.mrf.mxu2  ;;  %v2146_v18 = vadd.f32 %v4536_v53, %v2004_v58  ;;  %v4670_v53 = vld [vmem:[%s4927_s20] ss:$0 sm:$0xff]  ;;  %s2743_s20 = sshll.u32 %s4747_s27, 4  ;;  %s2744_s20 = int_to_ptr.vmem [resolvable:$true] %s2743_s20 }
 0x256   : > { %v4623_v52 = vadd.f32 %v1847_v49, %v1730_v48  ;;  %v4663_v49 = vld [vmem:[%s4926_s28] ss:$0 sm:$0xff] }
 0x25a   : > { %v1966_v15 = vpop.f32.mrf.mxu3 }
 0x25b   : > { %v1710_v24 = vpop.f32.mrf.mxu1 }
 0x25c   : > { %v1732_v46 = vadd.f32 %v1710_v24, %v4540_v13  ;;  %v4642_v2 = vpop.f32.mrf.mxu0 }
 0x25d   : > { %v1849_v41 = vpop.f32.mrf.mxu2 }
 0x25e   : > { %v4628_v42 = vadd.f32 %v1849_v41, %v1731_v60  ;;  %2282 = vmatmul.bf16.gmra.mxu1 %v2188_v50  ;;  %v3381_v50 = vld [vmem:[#allocation8] sm:$0xff] }
 0x25f   : > { %2581 = vmatpush.bf16.msra.mxu3 %v3381_v50 }
 0x262   : > { %2419 = vmatmul.bf16.gmra.mxu2 %v2329_v39  ;;  %v1969_v55 = vpop.f32.mrf.mxu3 }
 0x263   : > { %v1712_v3 = vpop.f32.mrf.mxu1 }
 0x264   : > { %v1733_v12 = vadd.f32 %v1712_v3, %v1591_v0  ;;  %v4651_v21 = vpop.f32.mrf.mxu0  ;;  %v2006_v0 = vadd.f32 %v1969_v55, %v4575_v22 }
 0x265   : > { %v1852_v13 = vpop.f32.mrf.mxu2 }
 0x266   : > { %v4640_v63 = vadd.f32 %v1852_v13, %v1732_v46 }
 0x26a   : > { %v1971_v11 = vpop.f32.mrf.mxu3 }
 0x26b   : > { %v1715_v28 = vpop.f32.mrf.mxu1 }
 0x26c   : > { %v1734_v6 = vadd.f32 %v1715_v28, %v4553_v26  ;;  %v2248_v62 = vpop.f32.mrf.mxu0 }
 0x26d   : > { %v1854_v57 = vpop.f32.mrf.mxu2  ;;  %v2288_v45 = vadd.f32 %v2248_v62, %v2146_v18 }
 0x26e   : > { %v4645_v7 = vadd.f32 %v1854_v57, %v1733_v12 }
 0x272   : > { %2424 = vmatmul.bf16.gmra.mxu2 %v2330_v9  ;;  %v2005_v9 = vadd.f32 %v1966_v15, %v4568_v16  ;;  %v1974_v60 = vpop.f32.mrf.mxu3  ;;  %v2148_v15 = vadd.f32 %v4550_v27, %v2006_v0 }
 0x273   : > { %v1717_v59 = vpop.f32.mrf.mxu1  ;;  %v2008_v27 = vadd.f32 %v1974_v60, %v4587_v17 }
 0x274   : > { %v1735_v39 = vadd.f32 %v1717_v59, %v1593_v19  ;;  %v2250_v4 = vpop.f32.mrf.mxu0  ;;  %v2147_v24 = vadd.f32 %v4542_v14, %v2005_v9  ;;  %v2007_v19 = vadd.f32 %v1971_v11, %v4580_v54 }
 0x275   : > { %v1857_v1 = vpop.f32.mrf.mxu2 }
 0x276   : > { %v4653_v32 = vadd.f32 %v1857_v1, %v1734_v6  ;;  %v2289_v41 = vadd.f32 %v2250_v4, %v2147_v24  ;;  %v2149_v22 = vadd.f32 %v4556_v40, %v2007_v19 }
 0x27a   : > { %v1976_v13 = vpop.f32.mrf.mxu3 }
 0x27b   : > { %v2253_v26 = vpop.f32.mrf.mxu1 }
 0x27c   : > { %v2290_v59 = vadd.f32 %v2253_v26, %v2148_v15  ;;  %v2150_v26 = vadd.f32 %v4565_v5, %v2008_v27 }
 0x27d   : > { %v1859_v61 = vpop.f32.mrf.mxu2 }
 0x27e   : > { %v4655_v48 = vadd.f32 %v1859_v61, %v1735_v39 }
 0x282   : > { %v1979_v55 = vpop.f32.mrf.mxu3 }
 0x283   : > { %v2255_v25 = vpop.f32.mrf.mxu1  ;;  %v2010_v5 = vadd.f32 %v1979_v55, %v4597_v10 }
 0x284   : > { %v2291_v61 = vadd.f32 %v2255_v25, %v2149_v22  ;;  %v2009_v25 = vadd.f32 %v1976_v13, %v4590_v8 }
 0x285   : > { %v2390_v33 = vpop.f32.mrf.mxu2  ;;  %v2152_v13 = vadd.f32 %v4577_v31, %v2010_v5 }
 0x286   : > { %v2430_v47 = vadd.f32 %v2390_v33, %v2288_v45  ;;  %v2151_v17 = vadd.f32 %v4571_v56, %v2009_v25 }
 0x288   : > { %v2450_v29 = vmul.f32 %v4663_v49, %v2430_v47 }
 0x28a   : > { %v2470_v3 = vadd.f32 %v4670_v53, %v2450_v29  ;;  %v1981_v40 = vpop.f32.mrf.mxu3 }
 0x28b   : > { %v2258_v46 = vpop.f32.mrf.mxu1 }
 0x28c   : > { %v2486_v28 = vmax.f32 %v2470_v3, 0.0  ;;  %v2292_v24 = vadd.f32 %v2258_v46, %v2150_v26 }
 0x28d   : > { %v2392_v16 = vpop.f32.mrf.mxu2 }
 0x28e   : > { %v2431_v35 = vadd.f32 %v2392_v16, %v2289_v41 }
 0x290   : > { %v2451_v12 = vmul.f32 %v4663_v49, %v2431_v35 }
 0x292   : > { %v2471_v14 = vadd.f32 %v4670_v53, %v2451_v12  ;;  %v1984_v12 = vpop.f32.mrf.mxu3 }
 0x293   : > { %v2260_v50 = vpop.f32.mrf.mxu1  ;;  %v2012_v31 = vadd.f32 %v1984_v12, %v4610_v37 }
 0x294   : > { %v2487_v6 = vmax.f32 %v2471_v14, 0.0  ;;  %v2293_v60 = vadd.f32 %v2260_v50, %v2151_v17  ;;  %v2011_v50 = vadd.f32 %v1981_v40, %v4602_v43 }
 0x295   : > { %v2395_v57 = vpop.f32.mrf.mxu2  ;;  %v2154_v27 = vadd.f32 %v4593_v36, %v2012_v31 }
 0x296   : > { %v2502_v39 = vpack.c.bf16 %v2487_v6, %v2486_v28  ;;  %v2432_v1 = vadd.f32 %v2395_v57, %v2290_v59  ;;  %v2153_v10 = vadd.f32 %v4585_v30, %v2011_v50 }
 0x298   : > { %2582 = vmatmul.bf16.vlgmr.msra.gmra.mxu3 %v2502_v39  ;;  %v2452_v62 = vmul.f32 %v4663_v49, %v2432_v1 }
 0x29a   : > { %v2472_v9 = vadd.f32 %v4670_v53, %v2452_v62  ;;  %v1986_v39 = vpop.f32.mrf.mxu3 }
 0x29b   : > { %v2263_v33 = vpop.f32.mrf.mxu1 }
 0x29c   : > { %v2488_v11 = vmax.f32 %v2472_v9, 0.0  ;;  %v2294_v57 = vadd.f32 %v2263_v33, %v2152_v13 }
 0x29d   : > { %v2397_v58 = vpop.f32.mrf.mxu2 }
 0x29e   : > { %v2433_v18 = vadd.f32 %v2397_v58, %v2291_v61 }
 0x2a0   : > { %v2453_v45 = vmul.f32 %v4663_v49, %v2433_v18 }
 0x2a2   : > { %v2473_v54 = vadd.f32 %v4670_v53, %v2453_v45  ;;  %v1989_v33 = vpop.f32.mrf.mxu3 }
 0x2a3   : > { %v2265_v16 = vpop.f32.mrf.mxu1  ;;  %v2014_v36 = vadd.f32 %v1989_v33, %v4623_v52 }
 0x2a4   : > { %v2489_v47 = vmax.f32 %v2473_v54, 0.0  ;;  %v2295_v1 = vadd.f32 %v2265_v16, %v2153_v10  ;;  %v2013_v54 = vadd.f32 %v1986_v39, %v4615_v44 }
 0x2a5   : > { %v2400_v4 = vpop.f32.mrf.mxu2 }
 0x2a6   : > { %v2503_v41 = vpack.c.bf16 %v2489_v47, %v2488_v11  ;;  %v2434_v29 = vadd.f32 %v2400_v4, %v2292_v24  ;;  %v2155_v37 = vadd.f32 %v4599_v20, %v2013_v54 }
 0x2a8   : > { %2587 = vmatmul.bf16.gmra.mxu3 %v2503_v41  ;;  %v2454_v35 = vmul.f32 %v4663_v49, %v2434_v29 }
 0x2aa   : > { %v2474_v14 = vadd.f32 %v4670_v53, %v2454_v35  ;;  %v1991_v24 = vpop.f32.mrf.mxu3  ;;  %v2156_v35 = vadd.f32 %v4608_v51, %v2014_v36 }
 0x2ab   : > { %v2268_v46 = vpop.f32.mrf.mxu1  ;;  %v2015_v12 = vadd.f32 %v1991_v24, %v4628_v42 }
 0x2ac   : > { %v2490_v28 = vmax.f32 %v2474_v14, 0.0  ;;  %v2296_v26 = vadd.f32 %v2268_v46, %v2154_v27 }
 0x2ad   : > { %v2402_v0 = vpop.f32.mrf.mxu2  ;;  %v2157_v52 = vadd.f32 %v4613_v38, %v2015_v12 }
 0x2ae   : > { %v2435_v3 = vadd.f32 %v2402_v0, %v2293_v60 }
 0x2b0   : > { %v2455_v15 = vmul.f32 %v4663_v49, %v2435_v3 }
 0x2b2   : > { %v2475_v8 = vadd.f32 %v4670_v53, %v2455_v15  ;;  %v1994_v15 = vpop.f32.mrf.mxu3 }
 0x2b3   : > { %v2270_v55 = vpop.f32.mrf.mxu1  ;;  %v2016_v51 = vadd.f32 %v1994_v15, %v4640_v63 }
 0x2b4   : > { %v2491_v6 = vmax.f32 %v2475_v8, 0.0  ;;  %v2297_v4 = vadd.f32 %v2270_v55, %v2155_v37 }
 0x2b5   : > { %v2405_v56 = vpop.f32.mrf.mxu2 }
 0x2b6   : > { %v2504_v19 = vpack.c.bf16 %v2491_v6, %v2490_v28  ;;  %v2436_v59 = vadd.f32 %v2405_v56, %v2294_v57 }
 0x2b8   : > { %2592 = vmatmul.bf16.gmra.mxu3 %v2504_v19  ;;  %v2456_v22 = vmul.f32 %v4663_v49, %v2436_v59  ;;  %v2158_v59 = vadd.f32 %v4625_v23, %v2016_v51 }
 0x2ba   : > { %v2476_v58 = vadd.f32 %v4670_v53, %v2456_v22  ;;  %v1996_v42 = vpop.f32.mrf.mxu3 }
 0x2bb   : > { %v2273_v47 = vpop.f32.mrf.mxu1  ;;  %v2017_v22 = vadd.f32 %v1996_v42, %v4645_v7 }
 0x2bc   : > { %v2492_v9 = vmax.f32 %v2476_v58, 0.0  ;;  %v2298_v5 = vadd.f32 %v2273_v47, %v2156_v35  ;;  %v457_v35 = vld [vmem:[%s4019_s6 + $0x10] sm:$0xff]  }
 0x2bd   : > { %v2407_v61 = vpop.f32.mrf.mxu2  ;;  %v2159_v63 = vadd.f32 %v4633_v34, %v2017_v22 }
 0x2be   : > { %v2437_v62 = vadd.f32 %v2407_v61, %v2295_v1 }
 0x2c0   : > { %v2457_v18 = vmul.f32 %v4663_v49, %v2437_v62 }
 0x2c2   : > { %v2477_v43 = vadd.f32 %v4670_v53, %v2457_v18  ;;  %v1999_v31 = vpop.f32.mrf.mxu3 }
 0x2c3   : > { %v2275_v44 = vpop.f32.mrf.mxu1  ;;  %v2018_v23 = vadd.f32 %v1999_v31, %v4653_v32 }
 0x2c4   : > { %v2493_v45 = vmax.f32 %v2477_v43, 0.0  ;;  %v2299_v13 = vadd.f32 %v2275_v44, %v2157_v52 }
 0x2c5   : > { %v2410_v30 = vpop.f32.mrf.mxu2 }
 0x2c6   : > { %v2505_v11 = vpack.c.bf16 %v2493_v45, %v2492_v9  ;;  %v2438_v40 = vadd.f32 %v2410_v30, %v2296_v26  ;;  %v2160_v30 = vadd.f32 %v4642_v2, %v2018_v23 }
 0x2c8   : > { %2597 = vmatmul.bf16.gmra.mxu3 %v2505_v11  ;;  %v2458_v25 = vmul.f32 %v4663_v49, %v2438_v40 }
 0x2ca   : > { %v2478_v16 = vadd.f32 %v4670_v53, %v2458_v25  ;;  %v2001_v34 = vpop.f32.mrf.mxu3 }
 0x2cb   : > { %v2278_v46 = vpop.f32.mrf.mxu1  ;;  %v2019_v47 = vadd.f32 %v2001_v34, %v4655_v48 }
 0x2cc   : > { %v2494_v0 = vmax.f32 %v2478_v16, 0.0  ;;  %v2300_v55 = vadd.f32 %v2278_v46, %v2158_v59 }
 0x2cd   : > { %v2412_v41 = vpop.f32.mrf.mxu2  ;;  %v2161_v25 = vadd.f32 %v4651_v21, %v2019_v47  ;;  %v4734_v21 = vld [vmem:[%s4929_s3] ss:$0 sm:$0xff]  ;;  %s3680_s3 = sshra.s32 %s2746_s2, 4  ;;  %s3681_s3 = int_to_ptr.hbm [resolvable:$true] %s3680_s3 }
 0x2ce   : > { %v2439_v29 = vadd.f32 %v2412_v41, %v2297_v4  ;;  %s3682_s5 = scalar_lea.hbm %s3681_s3, 128  ;;  %p3687_p0 = scmp.lt.s32.totalorder %s3681_s3, %s4932_s12 }
 0x2cf   : > { %p3683_p1 = scmp.ne.s32.totalorder %s3681_s3, %s3682_s5  ;;  %p3688_p2 = scmp.lt.s32.totalorder %s3686_s23, %s3682_s5 }
 0x2d0   : > { %v2459_v17 = vmul.f32 %v4663_v49, %v2439_v29 }
 0x2d1   : > { %p3684_p4 = pnand %p3683_p1, %p3930_p6  ;;  %p3689_p3 = por %p3688_p2, %p3687_p0 }
 0x2d2   : > { %v2479_v60 = vadd.f32 %v4670_v53, %v2459_v17 }
 0x2d3   : > { %v2280_v38 = vpop.f32.mrf.mxu1  ;;  %p3685_p11 = pneg %p3684_p4 }
 0x2d4   : > { %v2495_v3 = vmax.f32 %v2479_v60, 0.0  ;;  %v2301_v58 = vadd.f32 %v2280_v38, %v2159_v63 }
 0x2d5   : > { %v2415_v20 = vpop.f32.mrf.mxu2  ;;  %p3690_p5 = pnand %p3689_p3, %p3685_p11 }
 0x2d6   : > { %v2506_v14 = vpack.c.bf16 %v2495_v3, %v2494_v0  ;;  %v2440_v8 = vadd.f32 %v2415_v20, %v2298_v5  ;;  %v4740_v0 = vld [vmem:[%s4930_s14] ss:$0 sm:$0xff]  ;;  %v2663_v3 = vunpack.c.l.bf16 %v457_v35 }
 0x2d8   : > { %2602 = vmatmul.bf16.gmra.mxu3 %v2506_v14  ;;  %v2460_v28 = vmul.f32 %v4663_v49, %v2440_v8  ;;  %v2664_v8 = vunpack.c.h.bf16 %v457_v35 }
 0x2da   : > { %v2480_v50 = vadd.f32 %v4670_v53, %v2460_v28 }
 0x2db   : > { %v2283_v27 = vpop.f32.mrf.mxu1 }
 0x2dc   : > { %v2496_v39 = vmax.f32 %v2480_v50, 0.0  ;;  %v2302_v40 = vadd.f32 %v2283_v27, %v2160_v30 }
 0x2dd   : > { %v2417_v6 = vpop.f32.mrf.mxu2 }
 0x2de   : > { %v2441_v56 = vadd.f32 %v2417_v6, %v2299_v13  ;;  %v459_v13 = vld [vmem:[%s4019_s6 + $0x18] sm:$0xff]  }
 0x2df   : > { %v2665_v51 = vunpack.c.l.bf16 %v459_v13 }
 0x2e0   : > { %v2461_v57 = vmul.f32 %v4663_v49, %v2441_v56 }
 0x2e2   : > { %v2481_v19 = vadd.f32 %v4670_v53, %v2461_v57 }
 0x2e3   : > { %v2285_v32 = vpop.f32.mrf.mxu1 }
 0x2e4   : > { %v2497_v10 = vmax.f32 %v2481_v19, 0.0  ;;  %v2303_v24 = vadd.f32 %v2285_v32, %v2161_v25  ;;  %v465_v25 = vld [vmem:[%s4019_s6 + $0x30] sm:$0xff]  }
 0x2e5   : > { %v2420_v1 = vpop.f32.mrf.mxu2 }
 0x2e6   : > { %v2507_v61 = vpack.c.bf16 %v2497_v10, %v2496_v39  ;;  %v2442_v62 = vadd.f32 %v2420_v1, %v2300_v55  ;;  %v2666_v39 = vunpack.c.h.bf16 %v459_v13  ;;  %v461_v1 = vld [vmem:[%s4019_s6 + $0x20] sm:$0xff]  }
 0x2e8   : > { %2607 = vmatmul.bf16.gmra.mxu3 %v2507_v61  ;;  %v2462_v18 = vmul.f32 %v4663_v49, %v2442_v62  ;;  %v2667_v62 = vunpack.c.l.bf16 %v461_v1 }
 0x2ea   : > { %v2482_v9 = vadd.f32 %v4670_v53, %v2462_v18 }
 0x2ec   : > { %v2498_v54 = vmax.f32 %v2482_v9, 0.0  ;;  %v463_v9 = vld [vmem:[%s4019_s6 + $0x28] sm:$0xff]  }
 0x2ed   : > { %v2422_v43 = vpop.f32.mrf.mxu2 }
 0x2ee   : > { %v2443_v33 = vadd.f32 %v2422_v43, %v2301_v58 }
 0x2f0   : > { %v2463_v45 = vmul.f32 %v4663_v49, %v2443_v33  ;;  %v2668_v33 = vunpack.c.h.bf16 %v461_v1 }
 0x2f2   : > { %v2483_v7 = vadd.f32 %v4670_v53, %v2463_v45 }
 0x2f4   : > { %v2499_v26 = vmax.f32 %v2483_v7, 0.0 }
 0x2f5   : > { %v2425_v11 = vpop.f32.mrf.mxu2 }
 0x2f6   : > { %v2508_v37 = vpack.c.bf16 %v2499_v26, %v2498_v54  ;;  %v2444_v4 = vadd.f32 %v2425_v11, %v2302_v40  ;;  %v2669_v54 = vunpack.c.l.bf16 %v463_v9 }
 0x2f8   : > { %2612 = vmatmul.bf16.gmra.mxu3 %v2508_v37  ;;  %v2464_v41 = vmul.f32 %v4663_v49, %v2444_v4  ;;  %v2670_v37 = vunpack.c.h.bf16 %v463_v9 }
 0x2fa   : > { %v2484_v36 = vadd.f32 %v4670_v53, %v2464_v41 }
 0x2fc   : > { %v2500_v17 = vmax.f32 %v2484_v36, 0.0 }
 0x2fd   : > { %v2427_v29 = vpop.f32.mrf.mxu2 }
 0x2fe   : > { %v2445_v2 = vadd.f32 %v2427_v29, %v2303_v24 }
 0x300   : > { %v2465_v16 = vmul.f32 %v4663_v49, %v2445_v2  ;;  %v2671_v2 = vunpack.c.l.bf16 %v465_v25 }
 0x302   : > { %v2485_v48 = vadd.f32 %v4670_v53, %v2465_v16 }
 0x304   : > { %v2501_v44 = vmax.f32 %v2485_v48, 0.0 }
 0x306   : > { %v2509_v60 = vpack.c.bf16 %v2501_v44, %v2500_v17 }
 0x308   : > { %2617 = vmatmul.bf16.gmra.mxu3 %v2509_v60  ;;  %v2672_v60 = vunpack.c.h.bf16 %v465_v25 }
 0x31b   : > { %v2583_v49 = vpop.f32.mrf.mxu3 }
 0x31c   : > { %v2627_v53 = vmul.f32 %v4734_v21, %v2583_v49 }
 0x31e   : > { %v2647_v20 = vadd.f32 %v4740_v0, %v2627_v53  ;;  %v467_v53 = vld [vmem:[%s4019_s6 + $0x38] sm:$0xff]  }
 0x31f   : > { %v2674_v13 = vunpack.c.h.bf16 %v467_v53 }
 0x320   : > { %v2679_v12 = vadd.f32 %v2663_v3, %v2647_v20 }
 0x322   : > { %v2695_v5 = vmax.f32 %v2679_v12, 0.0 }
 0x323   : > { %v2585_v14 = vpop.f32.mrf.mxu3 }
 0x324   : > { %2711 = vst [vmem:[%s4747_s27] sm:$0xff] %v2695_v5  ;;  %v2628_v15 = vmul.f32 %v4734_v21, %v2585_v14  ;;  %v2673_v5 = vunpack.c.l.bf16 %v467_v53 }
 0x326   : > { %v2648_v52 = vadd.f32 %v4740_v0, %v2628_v15 }
 0x328   : > { %v2680_v46 = vadd.f32 %v2664_v8, %v2648_v52 }
 0x32a   : > { %v2696_v28 = vmax.f32 %v2680_v46, 0.0 }
 0x32b   : > { %v2588_v6 = vpop.f32.mrf.mxu3 }
 0x32c   : > { %2712 = vst [vmem:[%s4747_s27 + $0x8] sm:$0xff] %v2696_v28  ;;  %v2629_v56 = vmul.f32 %v4734_v21, %v2588_v6 }
 0x32e   : > { %v2649_v50 = vadd.f32 %v4740_v0, %v2629_v56  ;;  %v469_v56 = vld [vmem:[%s4019_s6 + $0x40] sm:$0xff]  }
 0x32f   : > { %v2676_v1 = vunpack.c.h.bf16 %v469_v56 }
 0x330   : > { %v2681_v57 = vadd.f32 %v2665_v51, %v2649_v50 }
 0x332   : > { %v2697_v42 = vmax.f32 %v2681_v57, 0.0 }
 0x333   : > { %v2590_v19 = vpop.f32.mrf.mxu3 }
 0x334   : > { %2713 = vst [vmem:[%s4747_s27 + $0x10] sm:$0xff] %v2697_v42  ;;  %v2630_v59 = vmul.f32 %v4734_v21, %v2590_v19  ;;  %v2675_v42 = vunpack.c.l.bf16 %v469_v56 }
 0x336   : > { %v2650_v10 = vadd.f32 %v4740_v0, %v2630_v59 }
 0x338   : > { %v2682_v38 = vadd.f32 %v2666_v39, %v2650_v10 }
 0x33a   : > { %v2698_v22 = vmax.f32 %v2682_v38, 0.0 }
 0x33b   : > { %v2593_v55 = vpop.f32.mrf.mxu3 }
 0x33c   : > { %2714 = vst [vmem:[%s4747_s27 + $0x18] sm:$0xff] %v2698_v22  ;;  %v2631_v61 = vmul.f32 %v4734_v21, %v2593_v55 }
 0x33e   : > { %v2651_v63 = vadd.f32 %v4740_v0, %v2631_v61  ;;  %v471_v61 = vld [vmem:[%s4019_s6 + $0x48] sm:$0xff]  }
 0x33f   : > { %v2678_v9 = vunpack.c.h.bf16 %v471_v61 }
 0x340   : > { %v2683_v31 = vadd.f32 %v2667_v62, %v2651_v63 }
 0x342   : > { %v2699_v58 = vmax.f32 %v2683_v31, 0.0 }
 0x343   : > { %v2595_v18 = vpop.f32.mrf.mxu3 }
 0x344   : > { %2715 = vst [vmem:[%s4747_s27 + $0x20] sm:$0xff] %v2699_v58  ;;  %v2632_v43 = vmul.f32 %v4734_v21, %v2595_v18  ;;  %v2677_v58 = vunpack.c.l.bf16 %v471_v61 }
 0x346   : > { %v2652_v27 = vadd.f32 %v4740_v0, %v2632_v43 }
 0x348   : > { %v2684_v23 = vadd.f32 %v2668_v33, %v2652_v27 }
 0x34a   : > { %v2700_v45 = vmax.f32 %v2684_v23, 0.0 }
 0x34b   : > { %v2598_v7 = vpop.f32.mrf.mxu3 }
 0x34c   : > { %2716 = vst [vmem:[%s4747_s27 + $0x28] sm:$0xff] %v2700_v45  ;;  %v2633_v30 = vmul.f32 %v4734_v21, %v2598_v7 }
 0x34e   : > { %v2653_v26 = vadd.f32 %v4740_v0, %v2633_v30 }
 0x350   : > { %v2685_v34 = vadd.f32 %v2669_v54, %v2653_v26 }
 0x352   : > { %v2701_v11 = vmax.f32 %v2685_v34, 0.0 }
 0x353   : > { %v2600_v47 = vpop.f32.mrf.mxu3 }
 0x354   : > { %2717 = vst [vmem:[%s4747_s27 + $0x30] sm:$0xff] %v2701_v11  ;;  %v2634_v40 = vmul.f32 %v4734_v21, %v2600_v47 }
 0x356   : > { %v2654_v4 = vadd.f32 %v4740_v0, %v2634_v40 }
 0x358   : > { %v2686_v32 = vadd.f32 %v2670_v37, %v2654_v4 }
 0x35a   : > { %v2702_v24 = vmax.f32 %v2686_v32, 0.0 }
 0x35b   : > { %v2603_v41 = vpop.f32.mrf.mxu3 }
 0x35c   : > { %2718 = vst [vmem:[%s4747_s27 + $0x38] sm:$0xff] %v2702_v24  ;;  %v2635_v29 = vmul.f32 %v4734_v21, %v2603_v41 }
 0x35e   : > { %v2655_v36 = vadd.f32 %v4740_v0, %v2635_v29 }
 0x360   : > { %v2687_v16 = vadd.f32 %v2671_v2, %v2655_v36 }
 0x362   : > { %v2703_v48 = vmax.f32 %v2687_v16, 0.0 }
 0x363   : > { %v2605_v17 = vpop.f32.mrf.mxu3 }
 0x364   : > { %2719 = vst [vmem:[%s4747_s27 + $0x40] sm:$0xff] %v2703_v48  ;;  %v2636_v44 = vmul.f32 %v4734_v21, %v2605_v17 }
 0x366   : > { %v2656_v35 = vadd.f32 %v4740_v0, %v2636_v44 }
 0x368   : > { %v2688_v49 = vadd.f32 %v2672_v60, %v2656_v35 }
 0x36a   : > { %v2704_v3 = vmax.f32 %v2688_v49, 0.0 }
 0x36b   : > { %v2608_v20 = vpop.f32.mrf.mxu3 }
 0x36c   : > { %2720 = vst [vmem:[%s4747_s27 + $0x48] sm:$0xff] %v2704_v3  ;;  %v2637_v12 = vmul.f32 %v4734_v21, %v2608_v20 }
 0x36e   : > { %v2657_v14 = vadd.f32 %v4740_v0, %v2637_v12 }
 0x370   : > { %v2689_v15 = vadd.f32 %v2673_v5, %v2657_v14 }
 0x372   : > { %v2705_v8 = vmax.f32 %v2689_v15, 0.0 }
 0x373   : > { %v2610_v52 = vpop.f32.mrf.mxu3 }
 0x374   : > { %2721 = vst [vmem:[%s4747_s27 + $0x50] sm:$0xff] %v2705_v8  ;;  %v2638_v46 = vmul.f32 %v4734_v21, %v2610_v52 }
 0x376   : > { %v2658_v28 = vadd.f32 %v4740_v0, %v2638_v46 }
 0x378   : > { %v2690_v6 = vadd.f32 %v2674_v13, %v2658_v28 }
 0x37a   : > { %v2706_v51 = vmax.f32 %v2690_v6, 0.0 }
 0x37b   : > { %v2613_v50 = vpop.f32.mrf.mxu3 }
 0x37c   : > { %2722 = vst [vmem:[%s4747_s27 + $0x58] sm:$0xff] %v2706_v51  ;;  %v2639_v57 = vmul.f32 %v4734_v21, %v2613_v50 }
 0x37e   : > { %v2659_v19 = vadd.f32 %v4740_v0, %v2639_v57 }
 0x380   : > { %v2691_v59 = vadd.f32 %v2675_v42, %v2659_v19 }
 0x382   : > { %v2707_v39 = vmax.f32 %v2691_v59, 0.0 }
 0x383   : > { %v2615_v10 = vpop.f32.mrf.mxu3 }
 0x384   : > { %2723 = vst [vmem:[%s4747_s27 + $0x60] sm:$0xff] %v2707_v39  ;;  %v2640_v38 = vmul.f32 %v4734_v21, %v2615_v10 }
 0x386   : > { %v2660_v22 = vadd.f32 %v4740_v0, %v2640_v38 }
 0x388   : > { %v2692_v55 = vadd.f32 %v2676_v1, %v2660_v22 }
 0x38a   : > { %v2708_v62 = vmax.f32 %v2692_v55, 0.0 }
 0x38b   : > { %v2618_v63 = vpop.f32.mrf.mxu3 }
 0x38c   : > { %2724 = vst [vmem:[%s4747_s27 + $0x68] sm:$0xff] %v2708_v62  ;;  %v2641_v31 = vmul.f32 %v4734_v21, %v2618_v63 }
 0x38e   : > { %v2661_v18 = vadd.f32 %v4740_v0, %v2641_v31 }
 0x390   : > { %v2693_v43 = vadd.f32 %v2677_v58, %v2661_v18 }
 0x392   : > { %v2709_v33 = vmax.f32 %v2693_v43, 0.0 }
 0x393   : > { %v2620_v27 = vpop.f32.mrf.mxu3 }
 0x394   : > { %2725 = vst [vmem:[%s4747_s27 + $0x70] sm:$0xff] %v2709_v33  ;;  %v2642_v23 = vmul.f32 %v4734_v21, %v2620_v27 }
 0x396   : > { %v2662_v45 = vadd.f32 %v4740_v0, %v2642_v23 }
 0x398   : > { %v2694_v7 = vadd.f32 %v2678_v9, %v2662_v45 }
 0x39a   : > { %v2710_v30 = vmax.f32 %v2694_v7, 0.0 }
 0x39c   : > { %2726 = vst [vmem:[%s4747_s27 + $0x78] sm:$0xff] %v2710_v30 }
 0x39d   : > { %3693 = shalt.err (!%p3690_p5)
}
 0x39e   : > { %s3803_s29 = smov 128   ;;  %s3804_s21 = smov 8  }
 0x39f   : > { %3415 = dma.vmem_to_hbm [thread:$0]  (%p3930_p6), %s2744_s20, 2048, %s2746_s2, %s2728_s13, %s3803_s29, %s3803_s29, %s3804_s21  }
 0x3a0 PF: > { %s4934_s27 = sld [smem:[#allocation19_spill]] }
 0x3a1   : > { %s4935_s11 = sld [smem:[#allocation15_spill]] }
 0x3a6   : > { %p3442_p7 = scmp.ge.s32.totalorder %s4934_s27, 2 }
 0x3a7   : > { %s2760_s24 = sand.u32 1, %s4935_s11  }
 0x3a8   : > { %p3432_p8 = pnand %p3442_p7, %p3936_p10  ;;  %s2761_s28 = scalar_lea.sflag [#allocation4], %s2760_s24 }
 0x3aa   : > { %p3433_p9 = pneg %p3432_p8 }
 0x3ac   : > { %3751 = dma.done.wait (%p3433_p9), %s2761_s28, 2048  }
 0x3ad   : > { %3753 = vsyncadd (%p3433_p9), %s2761_s28, 4294965248  ;;  %s28_s23 = sadd.s32 1, %s4934_s27   ;;  %s4937_s13 = sld [smem:[#allocation16_spill]] }
 0x3ae   : > { %p25_p12 = scmp.ge.s32.totalorder %s28_s23, 6   ;;  %s4938_s19 = sld [smem:[#allocation18_spill]] }
 0x3af   : > { %s4939_s6 = sld [smem:[#allocation22_spill]]  ;;  %s4940_s14 = smov %s3764_s15 }
 0x3b0   : > { %s4941_s15 = smov %s4003_s9  ;;  %s4942_s16 = smov %s3772_s17 }
 0x3b1   : > { %s4943_s17 = smov %s3776_s18  ;;  %s4944_s18 = smov %s4006_s8 }
 0x3b2   : > { %s4945_s20 = smov %s3792_s22  ;;  %s4946_s21 = smov %s4949_s10 }
 0x3b3   :  { %27 = sbr.rel (!%p25_p12) target bundleno = 21 (0x15), region = 125 }
 0x3b5   : > { %s4947_s22 = smov %s4939_s6 }
 0x3b8   :  { %2767 = vsyncpa [#allocation3], 1 }
 0x3b9   :  { %2769 = vsyncpa [#allocation3 + $0x1], 1 }
 0x3ba   :  { %2770 = vsyncpa [#allocation6], 1 }
 0x3bb   :  { %2771 = vsyncpa [#allocation9], 1 }
 0x3bc   :  { %2772 = vsyncpa [#allocation4], 1 }
 0x3bd   :  { %2774 = vsyncpa [#allocation4 + $0x1], 1 }

</bundles_post_ra>
